<compile_context>
chip_gen: v5e
topology: v5e:2x2
jax: 0.10.0
libtpu: 0.0.40
codegen_flags: <defaults>
</compile_context>

<pallas_src>
import functools

import jax
import jax.numpy as jnp
from jax import lax
from jax.experimental import pallas as pl
from jax.experimental.pallas import tpu as pltpu

NEG_SLOPE = 0.2        # GATConv default negative_slope
MASK_VAL = -1e30       # additive mask for non-edges
LANE = 128             # TPU lane width
SUB = 8                # TPU sublane width


def _round_up(v, m):
    return ((v + m - 1) // m) * m


def _gat_layer(h_in, adj, w, a_src, a_dst, b):
    # Linear transform on the MXU:  h = x @ W                        [N, D]
    h = jnp.dot(h_in, w, preferred_element_type=jnp.float32)
    # Attention scalars as MXU contractions (stay 2-D, no XLU lane reductions):
    alpha_dst = lax.dot_general(h, a_dst, (((1,), (1,)), ((), ())),
                                preferred_element_type=jnp.float32)   # [N, 1]
    alpha_src = lax.dot_general(a_src, h, (((1,), (1,)), ((), ())),
                                preferred_element_type=jnp.float32)   # [1, N]
    # e[i, j] = LeakyReLU(alpha_dst[i] + alpha_src[j]) for edge j -> i
    e = alpha_dst + alpha_src                                         # [N, N]
    e = jnp.where(e > 0, e, NEG_SLOPE * e)
    # Masked softmax over incoming edges (row i = destination i).
    # NOTE: every row MUST have at least one unmasked entry (self-loops are
    # always present here, matching add_self_loops=True); then
    # exp(MASK_VAL - rowmax) underflows to exactly 0 and no second mask on p
    # is needed.
    e = jnp.where(adj > 0, e, MASK_VAL)
    e = e - jnp.max(e, axis=1, keepdims=True)
    p = jnp.exp(e)
    denom = jnp.sum(p, axis=1, keepdims=True)
    attn = p * pl.reciprocal(denom, approx=True)   # EUP slot, off the VALU path
    # Aggregate neighbors on the MXU and add bias.
    return jnp.dot(attn, h, preferred_element_type=jnp.float32) + b


def gat_kernel(x_ref, adj_ref, pool_ref, w_ref, vec_ref, out_ref, *, num_classes):
    x = x_ref[...]        # [Np, D]
    adj = adj_ref[...]    # [Np, Np]

    v1 = vec_ref[0]       # [8, D]: rows 0/1/2 = att_src / att_dst / bias (layer 1)
    v2 = vec_ref[1]       # [8, D]: rows 0/1/2 = att_src / att_dst / bias (layer 2)

    # conv1 -> ReLU   (dropout is identity at inference)
    h1 = _gat_layer(x, adj, w_ref[0], v1[0:1, :], v1[1:2, :], v1[2:3, :])
    h1 = jnp.maximum(h1, 0.0)

    # conv2
    h2 = _gat_layer(h1, adj, w_ref[1], v2[0:1, :], v2[1:2, :], v2[2:3, :])

    # global_mean_pool:  pooled[g] = mean_{n in graph g} h2[n]
    pooled = jnp.dot(pool_ref[...], h2, preferred_element_type=jnp.float32)  # [B, D]

    # log_softmax over the real classes only (padded class lanes masked out so
    # the zero-padded W2/b2 columns cannot leak into the normalizer).
    cls = lax.broadcasted_iota(jnp.int32, pooled.shape, 1)
    pooled = jnp.where(cls < num_classes, pooled, MASK_VAL)
    z = pooled - jnp.max(pooled, axis=1, keepdims=True)
    lse = jnp.log(jnp.sum(jnp.exp(z), axis=1, keepdims=True))
    out_ref[...] = z - lse


@jax.jit
def gat_forward(x, adj, pool, params):
    N, f_in = x.shape
    hid = params["w1"].shape[1]
    c = params["w2"].shape[1]
    b_graphs = pool.shape[0]

    # Common lane-dense feature width and padded node count.
    d = _round_up(max(f_in, hid, c), LANE)   # -> 128 here
    n_pad = _round_up(N, LANE)               # -> 128 here

    # ---- pad inputs (zero features; padding nodes isolated with a self-loop) ----
    xp = jnp.zeros((n_pad, d), jnp.float32).at[:N, :f_in].set(x)
    adjp = jnp.zeros((n_pad, n_pad), jnp.float32).at[:N, :N].set(adj)
    pad_idx = jnp.arange(N, n_pad)
    adjp = adjp.at[pad_idx, pad_idx].set(1.0)   # keep every softmax row well defined
    poolp = jnp.zeros((b_graphs, n_pad), jnp.float32).at[:, :N].set(pool)

    # ---- pack parameters: weights [2, D, D]; att_src/att_dst/bias rows [2, 8, D] ----
    w_packed = jnp.zeros((2, d, d), jnp.float32)
    w_packed = w_packed.at[0, :f_in, :hid].set(params["w1"])
    w_packed = w_packed.at[1, :hid, :c].set(params["w2"])

    vec_packed = jnp.zeros((2, SUB, d), jnp.float32)
    vec_packed = vec_packed.at[0, 0, :hid].set(params["att_src1"][0])
    vec_packed = vec_packed.at[0, 1, :hid].set(params["att_dst1"][0])
    vec_packed = vec_packed.at[0, 2, :hid].set(params["b1"][0])
    vec_packed = vec_packed.at[1, 0, :c].set(params["att_src2"][0])
    vec_packed = vec_packed.at[1, 1, :c].set(params["att_dst2"][0])
    vec_packed = vec_packed.at[1, 2, :c].set(params["b2"][0])

    # Everything (a few hundred KiB) fits comfortably in VMEM; no grid needed
    # at this size, so default scoped-VMEM limits are fine on v5e/v6e/v7x.
    vmem = pl.BlockSpec(memory_space=pltpu.MemorySpace.VMEM)
    out_padded = pl.pallas_call(
        functools.partial(gat_kernel, num_classes=c),
        out_shape=jax.ShapeDtypeStruct((b_graphs, d), jnp.float32),
        in_specs=[vmem] * 5,
        out_specs=vmem,
    )(xp, adjp, poolp, w_packed, vec_packed)

    return out_padded[:, :c]


def gat_reference(x, adj, pool, p):
    """Pure-JAX reference of the same dense-GAT math (sanity check, f32 exact)."""
    def layer(h_in, w, a_s, a_d, b):
        h = h_in @ w
        asrc = (h * a_s).sum(1)
        adst = (h * a_d).sum(1, keepdims=True)
        e = adst + asrc[None, :]
        e = jnp.where(e > 0, e, NEG_SLOPE * e)
        e = jnp.where(adj > 0, e, -jnp.inf)
        attn = jax.nn.softmax(e, axis=1)
        return attn @ h + b
    h1 = jnp.maximum(layer(x, p["w1"], p["att_src1"], p["att_dst1"], p["b1"]), 0.0)
    h2 = layer(h1, p["w2"], p["att_src2"], p["att_dst2"], p["b2"])
    return jax.nn.log_softmax(pool @ h2, axis=1)


if __name__ == "__main__":
    # ---- small deterministic problem ----
    N = 16            # nodes (2 graphs x 8 nodes)
    F_IN = 8          # num_feature
    HID = 16          # hidden_channels
    C = 4             # num_classes
    B = 2             # graphs in the batch

    key = jax.random.PRNGKey(0)
    k_x, k1, k2, k3, k4, k5, k6 = jax.random.split(key, 7)

    # node features
    x = jax.random.normal(k_x, (N, F_IN), dtype=jnp.float32)

    # directed ring edges within each graph (no duplicates), edge_index = [2, E]
    src, dst = [], []
    for g in range(B):
        base = g * 8
        for i in range(8):
            src.append(base + i)
            dst.append(base + (i + 1) % 8)
            src.append(base + (i + 1) % 8)
            dst.append(base + i)
    edge_index = jnp.array([src, dst], dtype=jnp.int32)            # [2, E]
    edge_weight = jax.random.uniform(k6, (edge_index.shape[1],))   # ignored (edge_dim=None)

    # dense adjacency adj[dst, src] = 1, plus self loops (add_self_loops=True)
    adj = jnp.zeros((N, N), dtype=jnp.float32)
    adj = adj.at[edge_index[1], edge_index[0]].set(1.0)
    adj = jnp.minimum(adj + jnp.eye(N, dtype=jnp.float32), 1.0)

    # batch assignment and mean-pooling matrix
    batch = jnp.array([0] * 8 + [1] * 8, dtype=jnp.int32)
    onehot = (batch[None, :] == jnp.arange(B)[:, None]).astype(jnp.float32)  # [B, N]
    pool = onehot / jnp.sum(onehot, axis=1, keepdims=True)

    # deterministic parameters (glorot-ish); shapes from GATConv(num_feature, hidden) etc.
    def glorot(k, shape):
        fan_in, fan_out = shape[0], shape[-1]
        s = jnp.sqrt(6.0 / (fan_in + fan_out))
        return jax.random.uniform(k, shape, jnp.float32, -s, s)

    params = {
        "w1": glorot(k1, (F_IN, HID)),
        "att_src1": glorot(k2, (1, HID)),
        "att_dst1": glorot(k3, (1, HID)),
        "b1": jnp.zeros((1, HID), jnp.float32),
        "w2": glorot(k4, (HID, C)),
        "att_src2": glorot(k5, (1, C)),
        "att_dst2": glorot(k6, (1, C)),
        "b2": jnp.zeros((1, C), jnp.float32),
    }

    out = gat_forward(x, adj, pool, params)
    out = jax.block_until_ready(out)

    ref = gat_reference(x, adj, pool, params)
    assert out.shape == (B, C)
    # Tolerance relaxed slightly vs. exact f32: the softmax normalization uses
    # the EUP approximate reciprocal (pl.reciprocal(approx=True)).
    assert jnp.allclose(out, ref, atol=2e-3, rtol=2e-3), "mismatch vs reference"

    # TODO(synk): dropout(p=0.3) omitted (inference forward); PyG GATConv ignores
    # edge_attr when edge_dim is None, so edge weights are intentionally unused.
    print("KERNEL_OK")
</pallas_src>

<mosaic_0001>
module attributes {stable_mosaic.version = 11 : i64} {
  func.func @gat_kernel(%arg0: memref<128x128xf32, #tpu.memory_space<vmem>>, %arg1: memref<128x128xf32, #tpu.memory_space<vmem>>, %arg2: memref<2x128xf32, #tpu.memory_space<vmem>>, %arg3: memref<2x128x128xf32, #tpu.memory_space<vmem>>, %arg4: memref<2x8x128xf32, #tpu.memory_space<vmem>>, %arg5: memref<2x128xf32, #tpu.memory_space<vmem>>) attributes {dimension_semantics = [], scalar_prefetch = 0 : i64, scratch_operands = 0 : i64, tpu.core_type = #tpu.core_type<tc>} {
    %c0 = arith.constant 0 : index
    %c0_0 = arith.constant 0 : index
    %0 = vector.load %arg0[%c0, %c0_0] : memref<128x128xf32, #tpu.memory_space<vmem>>, vector<128x128xf32>
    %c0_1 = arith.constant 0 : index
    %c0_2 = arith.constant 0 : index
    %1 = vector.load %arg1[%c0_1, %c0_2] : memref<128x128xf32, #tpu.memory_space<vmem>>, vector<128x128xf32>
    %c0_3 = arith.constant 0 : index
    %c0_4 = arith.constant 0 : index
    %c0_5 = arith.constant 0 : index
    %2 = vector.load %arg4[%c0_3, %c0_4, %c0_5] : memref<2x8x128xf32, #tpu.memory_space<vmem>>, vector<1x8x128xf32>
    %3 = vector.shape_cast %2 : vector<1x8x128xf32> to vector<8x128xf32>
    %c1 = arith.constant 1 : index
    %c0_6 = arith.constant 0 : index
    %c0_7 = arith.constant 0 : index
    %4 = vector.load %arg4[%c1, %c0_6, %c0_7] : memref<2x8x128xf32, #tpu.memory_space<vmem>>, vector<1x8x128xf32>
    %5 = vector.shape_cast %4 : vector<1x8x128xf32> to vector<8x128xf32>
    %c0_8 = arith.constant 0 : index
    %c0_9 = arith.constant 0 : index
    %c0_10 = arith.constant 0 : index
    %6 = vector.load %arg3[%c0_8, %c0_9, %c0_10] : memref<2x128x128xf32, #tpu.memory_space<vmem>>, vector<1x128x128xf32>
    %7 = vector.shape_cast %6 : vector<1x128x128xf32> to vector<128x128xf32>
    %8 = vector.extract_strided_slice %3 {offsets = [0, 0], sizes = [1, 128], strides = [1, 1]} : vector<8x128xf32> to vector<1x128xf32>
    %9 = vector.extract_strided_slice %3 {offsets = [1, 0], sizes = [1, 128], strides = [1, 1]} : vector<8x128xf32> to vector<1x128xf32>
    %10 = vector.extract_strided_slice %3 {offsets = [2, 0], sizes = [1, 128], strides = [1, 1]} : vector<8x128xf32> to vector<1x128xf32>
    %cst = arith.constant dense<0.000000e+00> : vector<128x128xf32>
    %11 = tpu.matmul %0, %7, %cst {dimension_numbers = #tpu.dot_dimension_numbers<[1], [0], [0], [1], [0, 0, 1, 1], [], []>} : vector<128x128xf32>, vector<128x128xf32>, vector<128x128xf32> -> vector<128x128xf32>
    %cst_11 = arith.constant dense<0.000000e+00> : vector<128x1xf32>
    %12 = tpu.matmul %11, %9, %cst_11 {dimension_numbers = #tpu.dot_dimension_numbers<[1], [1], [0], [0], [0, 0, 1, 0], [], []>} : vector<128x128xf32>, vector<1x128xf32>, vector<128x1xf32> -> vector<128x1xf32>
    %cst_12 = arith.constant dense<0.000000e+00> : vector<1x128xf32>
    %13 = tpu.matmul %8, %11, %cst_12 {dimension_numbers = #tpu.dot_dimension_numbers<[1], [1], [0], [0], [0, 0, 1, 0], [], []>} : vector<1x128xf32>, vector<128x128xf32>, vector<1x128xf32> -> vector<1x128xf32>
    %14 = vector.broadcast %12 : vector<128x1xf32> to vector<128x128xf32>
    %15 = vector.broadcast %13 : vector<1x128xf32> to vector<128x128xf32>
    %16 = arith.addf %14, %15 : vector<128x128xf32>
    %cst_13 = arith.constant 0.000000e+00 : f32
    %17 = vector.broadcast %cst_13 : f32 to vector<128x128xf32>
    %18 = arith.cmpf ogt, %16, %17 : vector<128x128xf32>
    %cst_14 = arith.constant 2.000000e-01 : f32
    %19 = vector.broadcast %cst_14 : f32 to vector<128x128xf32>
    %20 = arith.mulf %19, %16 : vector<128x128xf32>
    %21 = arith.select %18, %16, %20 : vector<128x128xi1>, vector<128x128xf32>
    %cst_15 = arith.constant 0.000000e+00 : f32
    %22 = vector.broadcast %cst_15 : f32 to vector<128x128xf32>
    %23 = arith.cmpf ogt, %1, %22 : vector<128x128xf32>
    %cst_16 = arith.constant -1.000000e+30 : f32
    %24 = vector.broadcast %cst_16 : f32 to vector<128x128xf32>
    %25 = arith.select %23, %21, %24 : vector<128x128xi1>, vector<128x128xf32>
    %cst_17 = arith.constant dense<0xFF800000> : vector<128xf32>
    %26 = vector.multi_reduction <maximumf>, %25, %cst_17 [1] : vector<128x128xf32> to vector<128xf32>
    %27 = vector.shape_cast %26 : vector<128xf32> to vector<128x1xf32>
    %28 = vector.broadcast %27 : vector<128x1xf32> to vector<128x128xf32>
    %29 = arith.subf %25, %28 : vector<128x128xf32>
    %30 = math.exp %29 : vector<128x128xf32>
    %cst_18 = arith.constant dense<0.000000e+00> : vector<128xf32>
    %31 = vector.multi_reduction <add>, %30, %cst_18 [1] : vector<128x128xf32> to vector<128xf32>
    %32 = vector.shape_cast %31 : vector<128xf32> to vector<128x1xf32>
    %33 = tpu.reciprocal %32 {approx = true} : vector<128x1xf32> -> vector<128x1xf32>
    %34 = vector.broadcast %33 : vector<128x1xf32> to vector<128x128xf32>
    %35 = arith.mulf %30, %34 : vector<128x128xf32>
    %cst_19 = arith.constant dense<0.000000e+00> : vector<128x128xf32>
    %36 = tpu.matmul %35, %11, %cst_19 {dimension_numbers = #tpu.dot_dimension_numbers<[1], [0], [0], [1], [0, 0, 1, 1], [], []>} : vector<128x128xf32>, vector<128x128xf32>, vector<128x128xf32> -> vector<128x128xf32>
    %37 = vector.broadcast %10 : vector<1x128xf32> to vector<128x128xf32>
    %38 = arith.addf %36, %37 : vector<128x128xf32>
    %cst_20 = arith.constant 0.000000e+00 : f32
    %39 = vector.broadcast %cst_20 : f32 to vector<128x128xf32>
    %40 = arith.maximumf %38, %39 : vector<128x128xf32>
    %c1_21 = arith.constant 1 : index
    %c0_22 = arith.constant 0 : index
    %c0_23 = arith.constant 0 : index
    %41 = vector.load %arg3[%c1_21, %c0_22, %c0_23] : memref<2x128x128xf32, #tpu.memory_space<vmem>>, vector<1x128x128xf32>
    %42 = vector.shape_cast %41 : vector<1x128x128xf32> to vector<128x128xf32>
    %43 = vector.extract_strided_slice %5 {offsets = [0, 0], sizes = [1, 128], strides = [1, 1]} : vector<8x128xf32> to vector<1x128xf32>
    %44 = vector.extract_strided_slice %5 {offsets = [1, 0], sizes = [1, 128], strides = [1, 1]} : vector<8x128xf32> to vector<1x128xf32>
    %45 = vector.extract_strided_slice %5 {offsets = [2, 0], sizes = [1, 128], strides = [1, 1]} : vector<8x128xf32> to vector<1x128xf32>
    %cst_24 = arith.constant dense<0.000000e+00> : vector<128x128xf32>
    %46 = tpu.matmul %40, %42, %cst_24 {dimension_numbers = #tpu.dot_dimension_numbers<[1], [0], [0], [1], [0, 0, 1, 1], [], []>} : vector<128x128xf32>, vector<128x128xf32>, vector<128x128xf32> -> vector<128x128xf32>
    %cst_25 = arith.constant dense<0.000000e+00> : vector<128x1xf32>
    %47 = tpu.matmul %46, %44, %cst_25 {dimension_numbers = #tpu.dot_dimension_numbers<[1], [1], [0], [0], [0, 0, 1, 0], [], []>} : vector<128x128xf32>, vector<1x128xf32>, vector<128x1xf32> -> vector<128x1xf32>
    %cst_26 = arith.constant dense<0.000000e+00> : vector<1x128xf32>
    %48 = tpu.matmul %43, %46, %cst_26 {dimension_numbers = #tpu.dot_dimension_numbers<[1], [1], [0], [0], [0, 0, 1, 0], [], []>} : vector<1x128xf32>, vector<128x128xf32>, vector<1x128xf32> -> vector<1x128xf32>
    %49 = vector.broadcast %47 : vector<128x1xf32> to vector<128x128xf32>
    %50 = vector.broadcast %48 : vector<1x128xf32> to vector<128x128xf32>
    %51 = arith.addf %49, %50 : vector<128x128xf32>
    %cst_27 = arith.constant 0.000000e+00 : f32
    %52 = vector.broadcast %cst_27 : f32 to vector<128x128xf32>
    %53 = arith.cmpf ogt, %51, %52 : vector<128x128xf32>
    %cst_28 = arith.constant 2.000000e-01 : f32
    %54 = vector.broadcast %cst_28 : f32 to vector<128x128xf32>
    %55 = arith.mulf %54, %51 : vector<128x128xf32>
    %56 = arith.select %53, %51, %55 : vector<128x128xi1>, vector<128x128xf32>
    %cst_29 = arith.constant 0.000000e+00 : f32
    %57 = vector.broadcast %cst_29 : f32 to vector<128x128xf32>
    %58 = arith.cmpf ogt, %1, %57 : vector<128x128xf32>
    %cst_30 = arith.constant -1.000000e+30 : f32
    %59 = vector.broadcast %cst_30 : f32 to vector<128x128xf32>
    %60 = arith.select %58, %56, %59 : vector<128x128xi1>, vector<128x128xf32>
    %cst_31 = arith.constant dense<0xFF800000> : vector<128xf32>
    %61 = vector.multi_reduction <maximumf>, %60, %cst_31 [1] : vector<128x128xf32> to vector<128xf32>
    %62 = vector.shape_cast %61 : vector<128xf32> to vector<128x1xf32>
    %63 = vector.broadcast %62 : vector<128x1xf32> to vector<128x128xf32>
    %64 = arith.subf %60, %63 : vector<128x128xf32>
    %65 = math.exp %64 : vector<128x128xf32>
    %cst_32 = arith.constant dense<0.000000e+00> : vector<128xf32>
    %66 = vector.multi_reduction <add>, %65, %cst_32 [1] : vector<128x128xf32> to vector<128xf32>
    %67 = vector.shape_cast %66 : vector<128xf32> to vector<128x1xf32>
    %68 = tpu.reciprocal %67 {approx = true} : vector<128x1xf32> -> vector<128x1xf32>
    %69 = vector.broadcast %68 : vector<128x1xf32> to vector<128x128xf32>
    %70 = arith.mulf %65, %69 : vector<128x128xf32>
    %cst_33 = arith.constant dense<0.000000e+00> : vector<128x128xf32>
    %71 = tpu.matmul %70, %46, %cst_33 {dimension_numbers = #tpu.dot_dimension_numbers<[1], [0], [0], [1], [0, 0, 1, 1], [], []>} : vector<128x128xf32>, vector<128x128xf32>, vector<128x128xf32> -> vector<128x128xf32>
    %72 = vector.broadcast %45 : vector<1x128xf32> to vector<128x128xf32>
    %73 = arith.addf %71, %72 : vector<128x128xf32>
    %c0_34 = arith.constant 0 : index
    %c0_35 = arith.constant 0 : index
    %74 = vector.load %arg2[%c0_34, %c0_35] : memref<2x128xf32, #tpu.memory_space<vmem>>, vector<2x128xf32>
    %cst_36 = arith.constant dense<0.000000e+00> : vector<2x128xf32>
    %75 = tpu.matmul %74, %73, %cst_36 {dimension_numbers = #tpu.dot_dimension_numbers<[1], [0], [0], [1], [0, 0, 1, 1], [], []>} : vector<2x128xf32>, vector<128x128xf32>, vector<2x128xf32> -> vector<2x128xf32>
    %76 = tpu.iota {dimensions = array<i32: 1>} : vector<2x128xi32>
    %c4_i32 = arith.constant 4 : i32
    %77 = vector.broadcast %c4_i32 : i32 to vector<2x128xi32>
    %78 = arith.cmpi slt, %76, %77 : vector<2x128xi32>
    %cst_37 = arith.constant -1.000000e+30 : f32
    %79 = vector.broadcast %cst_37 : f32 to vector<2x128xf32>
    %80 = arith.select %78, %75, %79 : vector<2x128xi1>, vector<2x128xf32>
    %cst_38 = arith.constant dense<0xFF800000> : vector<2xf32>
    %81 = vector.multi_reduction <maximumf>, %80, %cst_38 [1] : vector<2x128xf32> to vector<2xf32>
    %82 = vector.shape_cast %81 : vector<2xf32> to vector<2x1xf32>
    %83 = vector.broadcast %82 : vector<2x1xf32> to vector<2x128xf32>
    %84 = arith.subf %80, %83 : vector<2x128xf32>
    %85 = math.exp %84 : vector<2x128xf32>
    %cst_39 = arith.constant dense<0.000000e+00> : vector<2xf32>
    %86 = vector.multi_reduction <add>, %85, %cst_39 [1] : vector<2x128xf32> to vector<2xf32>
    %87 = vector.shape_cast %86 : vector<2xf32> to vector<2x1xf32>
    %88 = math.log %87 : vector<2x1xf32>
    %89 = vector.broadcast %88 : vector<2x1xf32> to vector<2x128xf32>
    %90 = arith.subf %84, %89 : vector<2x128xf32>
    %c0_40 = arith.constant 0 : index
    %c0_41 = arith.constant 0 : index
    %91 = vector.load %arg5[%c0_40, %c0_41] : memref<2x128xf32, #tpu.memory_space<vmem>>, vector<2x128xf32>
    tpu.vector_store %arg5[%c0_40, %c0_41], %90 {strides = array<i32>} : memref<2x128xf32, #tpu.memory_space<vmem>>, vector<2x128xf32>,
    return
  }
}

</mosaic_0001>

<bundles_post_ra>
// kernel: gat_forward.1
= control target key start
LH: loop header
LB: loop body
LE: loop exit
PB: predicated region body
PF: predicated region fallthrough
CT: control target
= control target key end

     0   :  { %s2007_s0 = inlined_call_operand.vmem [shape: f32[128,128], index: 0, kind: input, shape index: {}]   ;;  %s2008_s1 = inlined_call_operand.vmem [shape: f32[128,128], index: 1, kind: input, shape index: {}]   ;;  %s2009_s2 = inlined_call_operand.vmem [shape: f32[2,128], index: 2, kind: input, shape index: {}]   ;;  %s2010_s3 = inlined_call_operand.vmem [shape: f32[2,128,128], index: 3, kind: input, shape index: {}]   ;;  %s2011_s4 = inlined_call_operand.vmem [shape: f32[2,8,128], index: 4, kind: input, shape index: {}]   ;;  %s2012_s5 = inlined_call_operand.hbm [shape: f32[2,128], index: 5, kind: output, shape index: {}]  }
   0x1   :  { %v71_v0 = vld [vmem:[%s2010_s3 + $0x78] sm:$0xff]  ;;  %v70_v1 = vld [vmem:[%s2010_s3 + $0x70] sm:$0xff]  ;;  %v69_v2 = vld [vmem:[%s2010_s3 + $0x68] sm:$0xff] }
   0x2   :  { %1044 = vmatpush.msra.mxu2 %v71_v0  ;;  %72 = vmatpush.msra.mxu0 %v71_v0  ;;  %v68_v3 = vld [vmem:[%s2010_s3 + $0x60] sm:$0xff]  ;;  %v67_v4 = vld [vmem:[%s2010_s3 + $0x58] sm:$0xff] }
   0x3   :  { %1043 = vmatpush.msra.mxu1 %v71_v0  ;;  %1045 = vmatpush.msra.mxu3 %v71_v0 }
   0x4   :  { %1047 = vmatpush.msra.mxu2 %v70_v1  ;;  %73 = vmatpush.msra.mxu0 %v70_v1 }
   0x5   :  { %1046 = vmatpush.msra.mxu1 %v70_v1  ;;  %1048 = vmatpush.msra.mxu3 %v70_v1 }
   0x6   :  { %1050 = vmatpush.msra.mxu2 %v69_v2  ;;  %74 = vmatpush.msra.mxu0 %v69_v2 }
   0x7   :  { %1049 = vmatpush.msra.mxu1 %v69_v2  ;;  %1051 = vmatpush.msra.mxu3 %v69_v2 }
   0x8   :  { %10 = vsyncpa [#allocation3], 0  ;;  %1053 = vmatpush.msra.mxu2 %v68_v3  ;;  %75 = vmatpush.msra.mxu0 %v68_v3  ;;  %v66_v5 = vld [vmem:[%s2010_s3 + $0x50] sm:$0xff]  ;;  %v65_v6 = vld [vmem:[%s2010_s3 + $0x48] sm:$0xff]  ;;  %s1017_s23 = sshll.u32 %s2012_s5, 4  ;;  %s1018_s23 = int_to_ptr.hbm [resolvable:$true] %s1017_s23 }
   0x9   :  { %1052 = vmatpush.msra.mxu1 %v68_v3  ;;  %1054 = vmatpush.msra.mxu3 %v68_v3  ;;  %v64_v7 = vld [vmem:[%s2010_s3 + $0x40] sm:$0xff]  ;;  %v63_v8 = vld [vmem:[%s2010_s3 + $0x38] sm:$0xff]  ;;  %v62_v9 = vld [vmem:[%s2010_s3 + $0x30] sm:$0xff] }
   0xa   :  { %1056 = vmatpush.msra.mxu2 %v67_v4  ;;  %76 = vmatpush.msra.mxu0 %v67_v4  ;;  %v61_v10 = vld [vmem:[%s2010_s3 + $0x28] sm:$0xff]  ;;  %v60_v11 = vld [vmem:[%s2010_s3 + $0x20] sm:$0xff]  ;;  %v59_v12 = vld [vmem:[%s2010_s3 + $0x18] sm:$0xff] }
   0xb   :  { %1055 = vmatpush.msra.mxu1 %v67_v4  ;;  %1057 = vmatpush.msra.mxu3 %v67_v4  ;;  %v58_v13 = vld [vmem:[%s2010_s3 + $0x10] sm:$0xff]  ;;  %v57_v14 = vld [vmem:[%s2010_s3 + $0x8] sm:$0xff]  ;;  %v56_v15 = vld [vmem:[%s2010_s3] sm:$0xff] }
   0xc   :  { %1059 = vmatpush.msra.mxu2 %v66_v5  ;;  %77 = vmatpush.msra.mxu0 %v66_v5  ;;  %v31_v16 = vld [vmem:[%s2007_s0 + $0x50] sm:$0xff]  ;;  %v21_v17 = vld [vmem:[%s2007_s0] sm:$0xff]  ;;  %v36_v19 = vld [vmem:[%s2007_s0 + $0x78] sm:$0xff] }
   0xd   :  { %1058 = vmatpush.msra.mxu1 %v66_v5  ;;  %1060 = vmatpush.msra.mxu3 %v66_v5  ;;  %v25_v18 = vld [vmem:[%s2007_s0 + $0x20] sm:$0xff]  ;;  %v32_v20 = vld [vmem:[%s2007_s0 + $0x58] sm:$0xff]  ;;  %v22_v21 = vld [vmem:[%s2007_s0 + $0x8] sm:$0xff] }
   0xe   :  { %1062 = vmatpush.msra.mxu2 %v65_v6  ;;  %78 = vmatpush.msra.mxu0 %v65_v6  ;;  %v26_v22 = vld [vmem:[%s2007_s0 + $0x28] sm:$0xff]  ;;  %v33_v23 = vld [vmem:[%s2007_s0 + $0x60] sm:$0xff]  ;;  %v23_v24 = vld [vmem:[%s2007_s0 + $0x10] sm:$0xff] }
   0xf   :  { %1061 = vmatpush.msra.mxu1 %v65_v6  ;;  %1063 = vmatpush.msra.mxu3 %v65_v6  ;;  %v27_v25 = vld [vmem:[%s2007_s0 + $0x30] sm:$0xff]  ;;  %v34_v26 = vld [vmem:[%s2007_s0 + $0x68] sm:$0xff]  ;;  %v24_v27 = vld [vmem:[%s2007_s0 + $0x18] sm:$0xff] }
  0x10   :  { %1065 = vmatpush.msra.mxu2 %v64_v7  ;;  %79 = vmatpush.msra.mxu0 %v64_v7  ;;  %v28_v28 = vld [vmem:[%s2007_s0 + $0x38] sm:$0xff]  ;;  %v35_v29 = vld [vmem:[%s2007_s0 + $0x70] sm:$0xff]  ;;  %v29_v30 = vld [vmem:[%s2007_s0 + $0x40] sm:$0xff] }
  0x11   :  { %1064 = vmatpush.msra.mxu1 %v64_v7  ;;  %1066 = vmatpush.msra.mxu3 %v64_v7  ;;  %v30_v31 = vld [vmem:[%s2007_s0 + $0x48] sm:$0xff]  ;;  %v1380_v32 = vld [vmem:[%s2011_s4] sm:$0xff] }
  0x12   :  { %1068 = vmatpush.msra.mxu2 %v63_v8  ;;  %80 = vmatpush.msra.mxu0 %v63_v8  ;;  %v1385_v34 = vperm.slane %v1380_v32, 1  ;;  %v1429_v2 = vld [vmem:[%s2008_s1 + $0x8] sm:$0xff]  ;;  %v1434_v3 = vld [vmem:[%s2008_s1] sm:$0xff] }
  0x13   :  { %1067 = vmatpush.msra.mxu1 %v63_v8  ;;  %1069 = vmatpush.msra.mxu3 %v63_v8  ;;  %vm272_vm0 = vcmp.gt.f32.partialorder %v1429_v2, 0.0  ;;  %vm271_vm1 = vcmp.gt.f32.partialorder %v1434_v3, 0.0 }
  0x14   :  { %1071 = vmatpush.msra.mxu2 %v62_v9  ;;  %81 = vmatpush.msra.mxu0 %v62_v9 }
  0x15   :  { %1070 = vmatpush.msra.mxu1 %v62_v9  ;;  %1072 = vmatpush.msra.mxu3 %v62_v9  ;;  %v1441_v9 = vld [vmem:[%s2008_s1 + $0x10] sm:$0xff] }
  0x16   :  { %1074 = vmatpush.msra.mxu2 %v61_v10  ;;  %82 = vmatpush.msra.mxu0 %v61_v10  ;;  %vm273_vm5 = vcmp.gt.f32.partialorder %v1441_v9, 0.0 }
  0x17   :  { %1073 = vmatpush.msra.mxu1 %v61_v10  ;;  %1075 = vmatpush.msra.mxu3 %v61_v10 }
  0x18   :  { %1077 = vmatpush.msra.mxu2 %v60_v11  ;;  %83 = vmatpush.msra.mxu0 %v60_v11 }
  0x19   :  { %1076 = vmatpush.msra.mxu1 %v60_v11  ;;  %1078 = vmatpush.msra.mxu3 %v60_v11 }
  0x1a   :  { %1080 = vmatpush.msra.mxu2 %v59_v12  ;;  %84 = vmatpush.msra.mxu0 %v59_v12 }
  0x1b   :  { %1079 = vmatpush.msra.mxu1 %v59_v12  ;;  %1081 = vmatpush.msra.mxu3 %v59_v12 }
  0x1c   :  { %1083 = vmatpush.msra.mxu2 %v58_v13  ;;  %85 = vmatpush.msra.mxu0 %v58_v13 }
  0x1d   :  { %1082 = vmatpush.msra.mxu1 %v58_v13  ;;  %1084 = vmatpush.msra.mxu3 %v58_v13 }
  0x1e   :  { %1086 = vmatpush.msra.mxu2 %v57_v14  ;;  %86 = vmatpush.msra.mxu0 %v57_v14 }
  0x1f   :  { %1085 = vmatpush.msra.mxu1 %v57_v14  ;;  %1087 = vmatpush.msra.mxu3 %v57_v14 }
  0x20   :  { %1089 = vmatpush.msra.mxu2 %v56_v15  ;;  %87 = vmatpush.msra.mxu0 %v56_v15 }
  0x21   :  { %118 = vmatmul.f32.vlgmr.msra.gmra.mxu2 %v31_v16  ;;  %88 = vmatmul.f32.vlgmr.msra.gmra.mxu0 %v21_v17 }
  0x22   :  { %1088 = vmatpush.msra.mxu1 %v56_v15  ;;  %1090 = vmatpush.msra.mxu3 %v56_v15 }
  0x23   :  { %100 = vmatmul.f32.vlgmr.msra.gmra.mxu1 %v25_v18  ;;  %133 = vmatmul.f32.vlgmr.msra.gmra.mxu3 %v36_v19 }
  0x29   :  { %121 = vmatmul.f32.gmra.mxu2 %v32_v20  ;;  %91 = vmatmul.f32.gmra.mxu0 %v22_v21 }
  0x2b   :  { %103 = vmatmul.f32.gmra.mxu1 %v26_v22 }
  0x31   :  { %124 = vmatmul.f32.gmra.mxu2 %v33_v23  ;;  %94 = vmatmul.f32.gmra.mxu0 %v23_v24 }
  0x33   :  { %106 = vmatmul.f32.gmra.mxu1 %v27_v25 }
  0x39   :  { %127 = vmatmul.f32.gmra.mxu2 %v34_v26  ;;  %97 = vmatmul.f32.gmra.mxu0 %v24_v27 }
  0x3b   :  { %109 = vmatmul.f32.gmra.mxu1 %v28_v28  ;;  %v1468_v28 = vld [vmem:[%s2008_s1 + $0x20] sm:$0xff] }
  0x3c   :  { %vm275_vm9 = vcmp.gt.f32.partialorder %v1468_v28, 0.0 }
  0x41   :  { %130 = vmatmul.f32.gmra.mxu2 %v35_v29 }
  0x43   :  { %112 = vmatmul.f32.gmra.mxu1 %v29_v30  ;;  %v1473_v30 = vld [vmem:[%s2008_s1 + $0x18] sm:$0xff] }
  0x44   :  { %vm274_vm10 = vcmp.gt.f32.partialorder %v1473_v30, 0.0 }
  0x4b   :  { %115 = vmatmul.f32.gmra.mxu1 %v30_v31  ;;  %v1478_v31 = vld [vmem:[%s2008_s1 + $0x28] sm:$0xff] }
  0x4c   :  { %vm276_vm11 = vcmp.gt.f32.partialorder %v1478_v31, 0.0 }
  0x9e   :  { %v1382_v33 = vpop.f32.mrf.mxu0 }
  0x9f   :  { %v138_v53 = vmul.f32 %v1385_v34, %v1382_v33 }
  0xa0   :  { %v101_v35 = vpop.f32.mrf.mxu1 }
  0xa1   :  { %v142_v36 = vmul.f32 %v1385_v34, %v101_v35  ;;  %154 = vadd.xlane.f32.xlu0 %v138_v53 }
  0xa3   :  { %162 = vadd.xlane.f32.xlu2 %v142_v36 }
  0xa4   :  { %v119_v37 = vpop.f32.mrf.mxu2 }
  0xa5   :  { %v1389_v38 = vmul.f32 %v1385_v34, %v119_v37 }
  0xa6   :  { %v92_v39 = vpop.f32.mrf.mxu0  ;;  %v1391_v40 = vpop.f32.mrf.mxu3 }
  0xa7   :  { %186 = vmatpush.xpose.msrb.mxu1 %v1391_v40  ;;  %448 = vmatpush.msrb.mxu2 %v1391_v40  ;;  %v139_v59 = vmul.f32 %v1385_v34, %v92_v39 }
  0xa8   :  { %v104_v41 = vpop.f32.mrf.mxu1 }
  0xa9   :  { %v143_v42 = vmul.f32 %v1385_v34, %v104_v41  ;;  %156 = vadd.xlane.f32.xlu0 %v139_v59 }
  0xab   :  { %164 = vadd.xlane.f32.xlu2 %v143_v42 }
  0xac   :  { %v122_v43 = vpop.f32.mrf.mxu2 }
  0xad   :  { %v1397_v44 = vmul.f32 %v1385_v34, %v122_v43 }
  0xae   :  { %v95_v45 = vpop.f32.mrf.mxu0 }
  0xaf   :  { %v140_v46 = vmul.f32 %v1385_v34, %v95_v45 }
  0xb0   :  { %v107_v47 = vpop.f32.mrf.mxu1 }
  0xb1   :  { %158 = vadd.xlane.f32.xlu1 %v140_v46  ;;  %v144_v56 = vmul.f32 %v1385_v34, %v107_v47  ;;  %v1502_v46 = vld [vmem:[%s2008_s1 + $0x30] sm:$0xff] }
  0xb2   :  { %vm277_vm13 = vcmp.gt.f32.partialorder %v1502_v46, 0.0 }
  0xb4   :  { %v125_v48 = vpop.f32.mrf.mxu2 }
  0xb5   :  { %v1401_v49 = vmul.f32 %v1385_v34, %v125_v48 }
  0xb6   :  { %v98_v50 = vpop.f32.mrf.mxu0 }
  0xb7   :  { %v141_v51 = vmul.f32 %v1385_v34, %v98_v50 }
  0xb8   :  { %v110_v52 = vpop.f32.mrf.mxu1 }
  0xb9   :  { %160 = vadd.xlane.f32.xlu1 %v141_v51  ;;  %v1407_v54 = vmul.f32 %v1385_v34, %v110_v52 }
  0xbc   :  { %v128_v55 = vpop.f32.mrf.mxu2 }
  0xbd   :  { %v1411_v57 = vmul.f32 %v1385_v34, %v128_v55 }
  0xc0   :  { %v113_v58 = vpop.f32.mrf.mxu1 }
  0xc1   :  { %166 = vadd.xlane.f32.xlu1 %v144_v56  ;;  %v1415_v60 = vmul.f32 %v1385_v34, %v113_v58 }
  0xc4   :  { %v1417_v61 = vpop.f32.mrf.mxu2 }
  0xc5   :  { %187 = vmatpush.xpose.msrb.mxu1 %v1417_v61  ;;  %449 = vmatpush.msrb.mxu2 %v1417_v61 }
  0xc7   :  { %450 = vmatpush.msrb.mxu2 %v128_v55 }
  0xc8   :  { %v116_v62 = vpop.f32.mrf.mxu1 }
  0xc9   :  { %188 = vmatpush.xpose.msrb.mxu1 %v128_v55  ;;  %451 = vmatpush.msrb.mxu2 %v125_v48  ;;  %v147_v25 = vmul.f32 %v1385_v34, %v116_v62 }
  0xcb   :  { %452 = vmatpush.msrb.mxu2 %v122_v43 }
  0xcd   :  { %189 = vmatpush.xpose.msrb.mxu1 %v125_v48  ;;  %453 = vmatpush.msrb.mxu2 %v119_v37 }
  0xcf   :  { %454 = vmatpush.msrb.mxu2 %v116_v62 }
  0xd1   :  { %190 = vmatpush.xpose.msrb.mxu1 %v122_v43  ;;  %455 = vmatpush.msrb.mxu2 %v113_v58 }
  0xd3   :  { %456 = vmatpush.msrb.mxu2 %v110_v52 }
  0xd5   :  { %191 = vmatpush.xpose.msrb.mxu1 %v119_v37  ;;  %457 = vmatpush.msrb.mxu2 %v107_v47 }
  0xd7   :  { %458 = vmatpush.msrb.mxu2 %v104_v41 }
  0xd9   :  { %192 = vmatpush.xpose.msrb.mxu1 %v116_v62  ;;  %459 = vmatpush.msrb.mxu2 %v101_v35 }
  0xdb   :  { %460 = vmatpush.msrb.mxu2 %v98_v50 }
  0xdd   :  { %193 = vmatpush.xpose.msrb.mxu1 %v113_v58  ;;  %461 = vmatpush.msrb.mxu2 %v95_v45 }
  0xdf   :  { %462 = vmatpush.msrb.mxu2 %v92_v39 }
  0xe1   :  { %194 = vmatpush.xpose.msrb.mxu1 %v110_v52  ;;  %463 = vmatpush.msrb.mxu2 %v1382_v33 }
  0xe5   :  { %195 = vmatpush.xpose.msrb.mxu1 %v107_v47 }
  0xe9   :  { %196 = vmatpush.xpose.msrb.mxu1 %v104_v41 }
  0xed   :  { %197 = vmatpush.xpose.msrb.mxu1 %v101_v35 }
  0xf1   :  { %198 = vmatpush.xpose.msrb.mxu1 %v98_v50 }
  0xf5   :  { %199 = vmatpush.xpose.msrb.mxu1 %v95_v45 }
  0xf9   :  { %200 = vmatpush.xpose.msrb.mxu1 %v92_v39 }
  0xfd   :  { %201 = vmatpush.xpose.msrb.mxu1 %v1382_v33 }
 0x100   :  { %202 = vmatmul.f32.vlgmr.msrb.gmra.mxu1 %v1380_v32 }
 0x114   :  { %v155_v63 = vpop.xlane.xlu0 %154 }
 0x116   :  { %v163_v6 = vpop.xlane.xlu2 %162 }
 0x11c   :  { %v157_v5 = vpop.xlane.xlu0 %156 }
 0x11e   :  { %v165_v21 = vpop.xlane.xlu2 %164 }
 0x124   :  { %v159_v4 = vpop.xlane.xlu1 %158 }
 0x12c   :  { %v161_v20 = vpop.xlane.xlu1 %160 }
 0x134   :  { %v167_v42 = vpop.xlane.xlu1 %166 }
 0x17d   :  { %v203_v0 = vpop.f32.mrf.mxu1 }
 0x17e   :  { %v1424_v1 = vperm.slane %v203_v0, 0 }
 0x180   :  { %v208_v7 = vadd.f32 %v1424_v1, %v157_v5  ;;  %v207_v8 = vadd.f32 %v1424_v1, %v155_v63  ;;  %v209_v10 = vadd.f32 %v1424_v1, %v159_v4  ;;  %v211_v22 = vadd.f32 %v1424_v1, %v163_v6 }
 0x181   :  { %v210_v23 = vadd.f32 %v1424_v1, %v161_v20  ;;  %v212_v24 = vadd.f32 %v1424_v1, %v165_v21  ;;  %v213_v43 = vadd.f32 %v1424_v1, %v167_v42  ;;  %v1552_v20 = vld [vmem:[%s2008_s1 + $0x48] sm:$0xff] }
 0x182   :  { %vm224_vm2 = vcmp.gt.f32.partialorder %v208_v7, 0.0  ;;  %v240_v11 = vmul.f32 0.2, %v208_v7  ;;  %vm223_vm3 = vcmp.gt.f32.partialorder %v207_v8, 0.0  ;;  %v239_v12 = vmul.f32 0.2, %v207_v8 }
 0x183   :  { %vm225_vm4 = vcmp.gt.f32.partialorder %v209_v10, 0.0  ;;  %v241_v13 = vmul.f32 0.2, %v209_v10  ;;  %v243_v26 = vmul.f32 0.2, %v211_v22  ;;  %vm227_vm6 = vcmp.gt.f32.partialorder %v211_v22, 0.0 }
 0x184   :  { %v256_v14 = vsel %vm224_vm2, %v208_v7, %v240_v11  ;;  %v255_v15 = vsel %vm223_vm3, %v207_v8, %v239_v12  ;;  %v242_v27 = vmul.f32 0.2, %v210_v23  ;;  %v244_v29 = vmul.f32 0.2, %v212_v24  ;;  %v1536_v7 = vld [vmem:[%s2008_s1 + $0x40] sm:$0xff] }
 0x185   :  { %v1449_v16 = vsel %vm272_vm0, %v256_v14, -1e+30  ;;  %v287_v17 = vsel %vm271_vm1, %v255_v15, -1e+30  ;;  %v257_v18 = vsel %vm225_vm4, %v209_v10, %v241_v13  ;;  %vm226_vm7 = vcmp.gt.f32.partialorder %v210_v23, 0.0 }
 0x186   :  { %305 = vmax.xlane.f32.xlu2 %v1449_v16  ;;  %303 = vmax.xlane.f32.xlu0 %v287_v17  ;;  %v1456_v19 = vsel %vm273_vm5, %v257_v18, -1e+30  ;;  %vm228_vm8 = vcmp.gt.f32.partialorder %v212_v24, 0.0  ;;  %v259_v33 = vsel %vm227_vm6, %v211_v22, %v243_v26  ;;  %v258_v35 = vsel %vm226_vm7, %v210_v23, %v242_v27 }
 0x187   :  { %307 = vmax.xlane.f32.xlu1 %v1456_v19  ;;  %v260_v36 = vsel %vm228_vm8, %v212_v24, %v244_v29  ;;  %v291_v37 = vsel %vm275_vm9, %v259_v33, -1e+30  ;;  %v1487_v39 = vsel %vm274_vm10, %v258_v35, -1e+30  ;;  %v245_v45 = vmul.f32 0.2, %v213_v43 }
 0x188   :  { %v1491_v41 = vsel %vm276_vm11, %v260_v36, -1e+30  ;;  %vm229_vm12 = vcmp.gt.f32.partialorder %v213_v43, 0.0  ;;  %vm279_vm3 = vcmp.gt.f32.partialorder %v1536_v7, 0.0  ;;  %vm280_vm6 = vcmp.gt.f32.partialorder %v1552_v20, 0.0  ;;  %v1566_v33 = vld [vmem:[%s2008_s1 + $0x60] sm:$0xff] }
 0x189   :  { %v261_v47 = vsel %vm229_vm12, %v213_v43, %v245_v45  ;;  %vm283_vm8 = vcmp.gt.f32.partialorder %v1566_v33, 0.0  ;;  %v1578_v43 = vld [vmem:[%s2008_s1 + $0x50] sm:$0xff] }
 0x18a   :  { %v1507_v48 = vsel %vm277_vm13, %v261_v47, -1e+30 }
 0x18e   :  { %170 = vadd.xlane.f32.xlu2 %v1415_v60  ;;  %168 = vadd.xlane.f32.xlu0 %v1407_v54 }
 0x18f   :  { %172 = vadd.xlane.f32.xlu1 %v147_v25 }
 0x196   :  { %311 = vmax.xlane.f32.xlu2 %v291_v37  ;;  %309 = vmax.xlane.f32.xlu0 %v1487_v39 }
 0x197   :  { %313 = vmax.xlane.f32.xlu1 %v1491_v41 }
 0x19e   :  { %176 = vadd.xlane.f32.xlu2 %v1397_v44  ;;  %174 = vadd.xlane.f32.xlu0 %v1389_v38  ;;  %v152_v38 = vmul.f32 %v1385_v34, %v1417_v61  ;;  %v153_v44 = vmul.f32 %v1385_v34, %v1391_v40 }
 0x19f   :  { %178 = vadd.xlane.f32.xlu1 %v1401_v49 }
 0x1a6   :  { %315 = vmax.xlane.f32.xlu0 %v1507_v48 }
 0x1a7   :  { %180 = vadd.xlane.f32.xlu1 %v1411_v57  ;;  %v1519_v57 = vld [vmem:[%s2008_s1 + $0x38] sm:$0xff] }
 0x1a8   :  { %vm278_vm15 = vcmp.gt.f32.partialorder %v1519_v57, 0.0 }
 0x1af   :  { %182 = vadd.xlane.f32.xlu1 %v152_v38 }
 0x1b7   :  { %184 = vadd.xlane.f32.xlu1 %v153_v44 }
 0x1f9   :  { %v306_v49 = vpop.xlane.xlu2 %305  ;;  %v304_v50 = vpop.xlane.xlu0 %303 }
 0x1fa   :  { %v335_v51 = vsub.f32 %v287_v17, %v304_v50  ;;  %v308_v52 = vpop.xlane.xlu1 %307  ;;  %v336_v54 = vsub.f32 %v1449_v16, %v306_v49 }
 0x1fb   :  { %v337_v63 = vsub.f32 %v1456_v19, %v308_v52 }
 0x1fc   :  { %v351_v53 = vmul.f32 1.442695, %v335_v51  ;;  %v353_v34 = vmul.f32 1.442695, %v336_v54  ;;  %v1598_v54 = vld [vmem:[%s2008_s1 + $0x58] sm:$0xff] }
 0x1fd   :  { %v355_v11 = vmul.f32 1.442695, %v337_v63 }
 0x1fe   :  { %1092 = vpow2.f32 %v351_v53 }
 0x1ff   :  { %1094 = vpow2.f32 %v353_v34 }
 0x201   :  { %v171_v55 = vpop.xlane.xlu2 %170  ;;  %v169_v56 = vpop.xlane.xlu0 %168 }
 0x202   :  { %v214_v58 = vadd.f32 %v1424_v1, %v169_v56  ;;  %v173_v59 = vpop.xlane.xlu1 %172  ;;  %v215_v40 = vadd.f32 %v1424_v1, %v171_v55 }
 0x203   :  { %v216_v12 = vadd.f32 %v1424_v1, %v173_v59 }
 0x204   :  { %v246_v60 = vmul.f32 0.2, %v214_v58  ;;  %vm230_vm14 = vcmp.gt.f32.partialorder %v214_v58, 0.0  ;;  %v1524_v61 = vpop.eup %1092  ;;  %v247_v4 = vmul.f32 0.2, %v215_v40  ;;  %vm231_vm2 = vcmp.gt.f32.partialorder %v215_v40, 0.0 }
 0x205   :  { %383 = vadd.xlane.f32.xlu2 %v1524_v61  ;;  %v1540_v15 = vpop.eup %1094  ;;  %v248_v18 = vmul.f32 0.2, %v216_v12  ;;  %vm232_vm4 = vcmp.gt.f32.partialorder %v216_v12, 0.0 }
 0x206   :  { %v262_v62 = vsel %vm230_vm14, %v214_v58, %v246_v60  ;;  %v263_v14 = vsel %vm231_vm2, %v215_v40, %v247_v4  ;;  %vm281_vm14 = vcmp.gt.f32.partialorder %v1578_v43, 0.0  ;;  %v1614_v60 = vld [vmem:[%s2008_s1 + $0x68] sm:$0xff] }
 0x207   :  { %v1530_v0 = vsel %vm278_vm15, %v262_v62, -1e+30  ;;  %v1546_v17 = vsel %vm279_vm3, %v263_v14, -1e+30  ;;  %v264_v26 = vsel %vm232_vm4, %v216_v12, %v248_v18  ;;  %vm282_vm4 = vcmp.gt.f32.partialorder %v1598_v54, 0.0 }
 0x208   :  { %317 = vmax.xlane.f32.xlu0 %v1530_v0  ;;  %v1570_v36 = vsel %vm280_vm6, %v264_v26, -1e+30 }
 0x209   :  { %v312_v5 = vpop.xlane.xlu2 %311  ;;  %v310_v6 = vpop.xlane.xlu0 %309 }
 0x20a   :  { %v339_v8 = vsub.f32 %v291_v37, %v312_v5  ;;  %v314_v10 = vpop.xlane.xlu1 %313  ;;  %v338_v16 = vsub.f32 %v1487_v39, %v310_v6 }
 0x20b   :  { %v340_v39 = vsub.f32 %v1491_v41, %v314_v10 }
 0x20c   :  { %v359_v13 = vmul.f32 1.442695, %v339_v8  ;;  %v357_v22 = vmul.f32 1.442695, %v338_v16  ;;  %v1628_v8 = vld [vmem:[%s2008_s1 + $0x70] sm:$0xff] }
 0x20d   :  { %385 = vadd.xlane.f32.xlu2 %v1540_v15  ;;  %v361_v49 = vmul.f32 1.442695, %v340_v39 }
 0x20e   :  { %1096 = vpow2.f32 %v359_v13 }
 0x20f   :  { %1098 = vpow2.f32 %v355_v11 }
 0x210   :  { %319 = vmax.xlane.f32.xlu0 %v1546_v17  ;;  %1100 = vpow2.f32 %v357_v22 }
 0x211   :  { %v175_v19 = vpop.xlane.xlu0 %174  ;;  %v177_v35 = vpop.xlane.xlu2 %176  ;;  %1102 = vpow2.f32 %v361_v49 }
 0x212   :  { %v179_v21 = vpop.xlane.xlu1 %178  ;;  %v217_v25 = vadd.f32 %v1424_v1, %v175_v19  ;;  %v218_v45 = vadd.f32 %v1424_v1, %v177_v35 }
 0x213   :  { %v219_v23 = vadd.f32 %v1424_v1, %v179_v21 }
 0x214   :  { %v1555_v24 = vpop.eup %1096  ;;  %v249_v37 = vmul.f32 0.2, %v217_v25  ;;  %vm233_vm12 = vcmp.gt.f32.partialorder %v217_v25, 0.0  ;;  %v250_v51 = vmul.f32 0.2, %v218_v45  ;;  %vm234_vm2 = vcmp.gt.f32.partialorder %v218_v45, 0.0 }
 0x215   :  { %v1559_v27 = vpop.eup %1098  ;;  %v251_v29 = vmul.f32 0.2, %v219_v23  ;;  %391 = vadd.xlane.f32.xlu1 %v1555_v24  ;;  %vm235_vm7 = vcmp.gt.f32.partialorder %v219_v23, 0.0 }
 0x216   :  { %387 = vadd.xlane.f32.xlu2 %v1559_v27  ;;  %v265_v44 = vsel %vm233_vm12, %v217_v25, %v249_v37  ;;  %v1586_v41 = vpop.eup %1100  ;;  %v266_v55 = vsel %vm234_vm2, %v218_v45, %v250_v51  ;;  %vm2015_vm12 = vcmp.gt.f32.partialorder %v1614_v60, 0.0 }
 0x217   :  { %v267_v42 = vsel %vm235_vm7, %v219_v23, %v251_v29  ;;  %v1593_v53 = vsel %vm281_vm14, %v265_v44, -1e+30  ;;  %v1608_v59 = vpop.eup %1102 }
 0x218   :  { %321 = vmax.xlane.f32.xlu0 %v1570_v36  ;;  %v1583_v38 = vsel %vm283_vm8, %v267_v42, -1e+30 }
 0x219   :  { %v316_v47 = vpop.xlane.xlu0 %315 }
 0x21a   :  { %v181_v50 = vpop.xlane.xlu1 %180  ;;  %v341_v52 = vsub.f32 %v1507_v48, %v316_v47  ;;  %v1605_v48 = vsel %vm282_vm4, %v266_v55, -1e+30 }
 0x21b   :  { %v220_v58 = vadd.f32 %v1424_v1, %v181_v50 }
 0x21c   :  { %v363_v56 = vmul.f32 1.442695, %v341_v52 }
 0x21d   :  { %327 = vmax.xlane.f32.xlu1 %v1583_v38  ;;  %v252_v40 = vmul.f32 0.2, %v220_v58  ;;  %vm236_vm7 = vcmp.gt.f32.partialorder %v220_v58, 0.0 }
 0x21e   :  { %389 = vadd.xlane.f32.xlu2 %v1586_v41  ;;  %1104 = vpow2.f32 %v363_v56 }
 0x21f   :  { %v268_v63 = vsel %vm236_vm7, %v220_v58, %v252_v40  ;;  %vm2013_vm7 = vcmp.gt.f32.partialorder %v1628_v8, 0.0  ;;  %v1042_v40 = vld [vmem:[%s2010_s3 + $0xf8] sm:$0xff] }
 0x220   :  { %323 = vmax.xlane.f32.xlu0 %v1593_v53  ;;  %v1623_v6 = vsel %vm2015_vm12, %v268_v63, -1e+30  ;;  %546 = vmatpush.msrb.mxu3 %v1042_v40 }
 0x222   :  { %v183_v34 = vpop.xlane.xlu1 %182 }
 0x223   :  { %v221_v62 = vadd.f32 %v1424_v1, %v183_v34 }
 0x224   :  { %v1618_v4 = vpop.eup %1104 }
 0x225   :  { %v253_v5 = vmul.f32 0.2, %v221_v62  ;;  %vm237_vm2 = vcmp.gt.f32.partialorder %v221_v62, 0.0 }
 0x226   :  { %325 = vmax.xlane.f32.xlu2 %v1605_v48 }
 0x227   :  { %v269_v10 = vsel %vm237_vm2, %v221_v62, %v253_v5  ;;  %v1041_v62 = vld [vmem:[%s2010_s3 + $0xf0] sm:$0xff] }
 0x228   :  { %393 = vadd.xlane.f32.xlu0 %v1608_v59  ;;  %v1634_v11 = vsel %vm2013_vm7, %v269_v10, -1e+30  ;;  %547 = vmatpush.msrb.mxu3 %v1041_v62 }
 0x22a   :  { %v185_v19 = vpop.xlane.xlu1 %184 }
 0x22b   :  { %v222_v23 = vadd.f32 %v1424_v1, %v185_v19 }
 0x22d   :  { %v254_v37 = vmul.f32 0.2, %v222_v23  ;;  %vm238_vm2 = vcmp.gt.f32.partialorder %v222_v23, 0.0 }
 0x22e   :  { %395 = vadd.xlane.f32.xlu2 %v1618_v4 }
 0x22f   :  { %v270_v45 = vsel %vm238_vm2, %v222_v23, %v254_v37 }
 0x230   :  { %329 = vmax.xlane.f32.xlu0 %v1623_v6 }
 0x236   :  { %331 = vmax.xlane.f32.xlu2 %v1634_v11 }
 0x278   :  { %v384_v12 = vpop.xlane.xlu2 %383 }
 0x279   :  { %1106 = vrcp.f32 %v384_v12  ;;  %v1039_v12 = vld [vmem:[%s2010_s3 + $0xe0] sm:$0xff] }
 0x27b   :  { %v318_v13 = vpop.xlane.xlu0 %317 }
 0x27c   :  { %v342_v14 = vsub.f32 %v1530_v0, %v318_v13 }
 0x27e   :  { %v365_v16 = vmul.f32 1.442695, %v342_v14 }
 0x27f   :  { %v1107_v18 = vpop.eup %1106 }
 0x280   :  { %1108 = vpow2.f32 %v365_v16  ;;  %v386_v21 = vpop.xlane.xlu2 %385  ;;  %v431_v22 = vmul.f32 %v1107_v18, %v1524_v61  ;;  %v1647_v61 = vld [vmem:[%s2008_s1 + $0x78] sm:$0xff] }
 0x281   :  { %1110 = vrcp.f32 %v386_v21  ;;  %vm2014_vm7 = vcmp.gt.f32.partialorder %v1647_v61, 0.0  ;;  %v1038_v16 = vld [vmem:[%s2010_s3 + $0xd8] sm:$0xff] }
 0x282   :  { %464 = vmatmul.f32.vlgmr.msrb.gmra.mxu2 %v431_v22  ;;  %v1656_v50 = vsel %vm2014_vm7, %v270_v45, -1e+30 }
 0x283   :  { %v320_v25 = vpop.xlane.xlu0 %319 }
 0x284   :  { %v343_v26 = vsub.f32 %v1546_v17, %v320_v25 }
 0x286   :  { %v1641_v29 = vpop.eup %1108  ;;  %v367_v35 = vmul.f32 1.442695, %v343_v26  ;;  %v1035_v26 = vld [vmem:[%s2010_s3 + $0xc0] sm:$0xff] }
 0x287   :  { %397 = vadd.xlane.f32.xlu1 %v1641_v29  ;;  %v1111_v0 = vpop.eup %1110 }
 0x288   :  { %1112 = vpow2.f32 %v367_v35  ;;  %v392_v39 = vpop.xlane.xlu1 %391  ;;  %v432_v42 = vmul.f32 %v1111_v0, %v1540_v15 }
 0x289   :  { %v388_v1 = vpop.xlane.xlu2 %387 }
 0x28a   :  { %1114 = vrcp.f32 %v388_v1  ;;  %467 = vmatmul.f32.gmra.mxu2 %v432_v42 }
 0x28b   :  { %v322_v17 = vpop.xlane.xlu0 %321 }
 0x28c   :  { %v344_v47 = vsub.f32 %v1570_v36, %v322_v17 }
 0x28e   :  { %v1652_v44 = vpop.eup %1112  ;;  %v369_v49 = vmul.f32 1.442695, %v344_v47 }
 0x28f   :  { %399 = vadd.xlane.f32.xlu0 %v1652_v44  ;;  %333 = vmax.xlane.f32.xlu1 %v1656_v50 }
 0x290   :  { %v1115_v15 = vpop.eup %1114  ;;  %1116 = vpow2.f32 %v369_v49  ;;  %v328_v51 = vpop.xlane.xlu1 %327 }
 0x291   :  { %v390_v52 = vpop.xlane.xlu2 %389  ;;  %v347_v55 = vsub.f32 %v1583_v38, %v328_v51  ;;  %v433_v56 = vmul.f32 %v1115_v15, %v1559_v27  ;;  %v1040_v27 = vld [vmem:[%s2010_s3 + $0xe8] sm:$0xff] }
 0x292   :  { %1118 = vrcp.f32 %v390_v52  ;;  %548 = vmatpush.msrb.mxu3 %v1040_v27  ;;  %v1032_v51 = vld [vmem:[%s2010_s3 + $0xa8] sm:$0xff]  ;;  %v1030_v52 = vld [vmem:[%s2010_s3 + $0x98] sm:$0xff] }
 0x293   :  { %v375_v36 = vmul.f32 1.442695, %v347_v55  ;;  %470 = vmatmul.f32.gmra.mxu2 %v433_v56  ;;  %v324_v58 = vpop.xlane.xlu0 %323  ;;  %1120 = vrcp.f32 %v392_v39  ;;  %v1029_v55 = vld [vmem:[%s2010_s3 + $0x90] sm:$0xff]  ;;  %v1028_v56 = vld [vmem:[%s2010_s3 + $0x88] sm:$0xff] }
 0x294   :  { %v345_v34 = vsub.f32 %v1593_v53, %v324_v58  ;;  %549 = vmatpush.msrb.mxu3 %v1039_v12 }
 0x295   :  { %1122 = vpow2.f32 %v375_v36  ;;  %v1027_v36 = vld [vmem:[%s2010_s3 + $0x80] sm:$0xff] }
 0x296   :  { %v1669_v63 = vpop.eup %1116  ;;  %v371_v38 = vmul.f32 1.442695, %v345_v34  ;;  %550 = vmatpush.msrb.mxu3 %v1038_v16 }
 0x297   :  { %401 = vadd.xlane.f32.xlu2 %v1669_v63 }
 0x298   :  { %v1119_v53 = vpop.eup %1118  ;;  %1124 = vpow2.f32 %v371_v38 }
 0x299   :  { %v326_v5 = vpop.xlane.xlu2 %325  ;;  %v434_v10 = vmul.f32 %v1119_v53, %v1586_v41  ;;  %v1121_v18 = vpop.eup %1120  ;;  %v1037_v41 = vld [vmem:[%s2010_s3 + $0xd0] sm:$0xff]  ;;  %v1739_v53 = vperm.slane %v1380_v32, 2 }
 0x29a   :  { %v346_v13 = vsub.f32 %v1605_v48, %v326_v5  ;;  %v1036_v48 = vld [vmem:[%s2010_s3 + $0xc8] sm:$0xff]  ;;  %551 = vmatpush.msrb.mxu3 %v1037_v41  ;;  %v435_v25 = vmul.f32 %v1121_v18, %v1555_v24 }
 0x29b   :  { %473 = vmatmul.f32.gmra.mxu2 %v434_v10  ;;  %v394_v14 = vpop.xlane.xlu0 %393  ;;  %v1683_v21 = vpop.eup %1122 }
 0x29c   :  { %v373_v19 = vmul.f32 1.442695, %v346_v13  ;;  %552 = vmatpush.msrb.mxu3 %v1036_v48 }
 0x29e   :  { %v1688_v22 = vpop.eup %1124  ;;  %1126 = vpow2.f32 %v373_v19  ;;  %553 = vmatpush.msrb.mxu3 %v1035_v26 }
 0x29f   :  { %403 = vadd.xlane.f32.xlu0 %v1688_v22  ;;  %407 = vadd.xlane.f32.xlu2 %v1683_v21  ;;  %1128 = vrcp.f32 %v394_v14 }
 0x2a1   :  { %v396_v23 = vpop.xlane.xlu2 %395 }
 0x2a2   :  { %1130 = vrcp.f32 %v396_v23 }
 0x2a3   :  { %476 = vmatmul.f32.gmra.mxu2 %v435_v25  ;;  %v330_v35 = vpop.xlane.xlu0 %329 }
 0x2a4   :  { %v1699_v37 = vpop.eup %1126  ;;  %v348_v0 = vsub.f32 %v1623_v6, %v330_v35 }
 0x2a5   :  { %405 = vadd.xlane.f32.xlu1 %v1699_v37  ;;  %v1129_v39 = vpop.eup %1128 }
 0x2a6   :  { %v377_v1 = vmul.f32 1.442695, %v348_v0  ;;  %v436_v24 = vmul.f32 %v1129_v39, %v1608_v59  ;;  %v1034_v59 = vld [vmem:[%s2010_s3 + $0xb8] sm:$0xff] }
 0x2a7   :  { %554 = vmatpush.msrb.mxu3 %v1034_v59 }
 0x2a8   :  { %1132 = vpow2.f32 %v377_v1  ;;  %v1131_v47 = vpop.eup %1130 }
 0x2a9   :  { %v332_v42 = vpop.xlane.xlu2 %331  ;;  %v437_v6 = vmul.f32 %v1131_v47, %v1618_v4  ;;  %v1031_v4 = vld [vmem:[%s2010_s3 + $0xa0] sm:$0xff] }
 0x2aa   :  { %v349_v17 = vsub.f32 %v1634_v11, %v332_v42  ;;  %v1033_v11 = vld [vmem:[%s2010_s3 + $0xb0] sm:$0xff] }
 0x2ab   :  { %479 = vmatmul.f32.gmra.mxu2 %v436_v24  ;;  %555 = vmatpush.msrb.mxu3 %v1033_v11 }
 0x2ac   :  { %v379_v45 = vmul.f32 1.442695, %v349_v17 }
 0x2ad   :  { %556 = vmatpush.msrb.mxu3 %v1032_v51 }
 0x2ae   :  { %v1705_v49 = vpop.eup %1132  ;;  %1134 = vpow2.f32 %v379_v45 }
 0x2af   :  { %409 = vadd.xlane.f32.xlu0 %v1705_v49  ;;  %557 = vmatpush.msrb.mxu3 %v1031_v4 }
 0x2b1   :  { %558 = vmatpush.msrb.mxu3 %v1030_v52 }
 0x2b3   :  { %482 = vmatmul.f32.gmra.mxu2 %v437_v6  ;;  %559 = vmatpush.msrb.mxu3 %v1029_v55 }
 0x2b4   :  { %v1709_v15 = vpop.eup %1134 }
 0x2b5   :  { %411 = vadd.xlane.f32.xlu1 %v1709_v15  ;;  %560 = vmatpush.msrb.mxu3 %v1028_v56 }
 0x2b7   :  { %561 = vmatpush.msrb.mxu3 %v1027_v36 }
 0x2fa   :  { %v398_v58 = vpop.xlane.xlu1 %397 }
 0x2fb   :  { %1136 = vrcp.f32 %v398_v58 }
 0x301   :  { %v1137_v34 = vpop.eup %1136 }
 0x302   :  { %v400_v40 = vpop.xlane.xlu0 %399  ;;  %v334_v62 = vpop.xlane.xlu1 %333  ;;  %v438_v38 = vmul.f32 %v1137_v34, %v1641_v29 }
 0x303   :  { %1138 = vrcp.f32 %v400_v40  ;;  %v350_v27 = vsub.f32 %v1656_v50, %v334_v62 }
 0x304   :  { %485 = vmatmul.f32.gmra.mxu2 %v438_v38 }
 0x305   :  { %v381_v5 = vmul.f32 1.442695, %v350_v27  ;;  %v465_v10 = vpop.f32.mrf.mxu2 }
 0x306   :  { %v466_v12 = vadd.f32 %v465_v10, %v1739_v53 }
 0x307   :  { %1140 = vpow2.f32 %v381_v5 }
 0x308   :  { %v513_v14 = vmax.f32 %v466_v12, 0.0 }
 0x309   :  { %v1139_v13 = vpop.eup %1138 }
 0x30a   :  { %v402_v16 = vpop.xlane.xlu2 %401  ;;  %v439_v18 = vmul.f32 %v1139_v13, %v1652_v44  ;;  %562 = vmatmul.f32.vlgmr.msrb.gmra.mxu3 %v513_v14 }
 0x30b   :  { %1142 = vrcp.f32 %v402_v16 }
 0x30c   :  { %488 = vmatmul.f32.gmra.mxu2 %v439_v18 }
 0x30d   :  { %v1141_v29 = vpop.eup %1140  ;;  %v468_v19 = vpop.f32.mrf.mxu2 }
 0x30e   :  { %413 = vadd.xlane.f32.xlu2 %v1141_v29  ;;  %v469_v32 = vadd.f32 %v468_v19, %v1739_v53 }
 0x310   :  { %v514_v41 = vmax.f32 %v469_v32, 0.0 }
 0x311   :  { %v1143_v50 = vpop.eup %1142 }
 0x312   :  { %v404_v48 = vpop.xlane.xlu0 %403  ;;  %v440_v23 = vmul.f32 %v1143_v50, %v1669_v63  ;;  %565 = vmatmul.f32.gmra.mxu3 %v514_v41  ;;  %v408_v1 = vpop.xlane.xlu2 %407 }
 0x313   :  { %1144 = vrcp.f32 %v404_v48 }
 0x314   :  { %491 = vmatmul.f32.gmra.mxu2 %v440_v23 }
 0x316   :  { %v471_v25 = vpop.f32.mrf.mxu2 }
 0x317   :  { %v472_v26 = vadd.f32 %v471_v25, %v1739_v53 }
 0x318   :  { %v406_v44 = vpop.xlane.xlu1 %405 }
 0x319   :  { %v1145_v35 = vpop.eup %1144  ;;  %v515_v0 = vmax.f32 %v472_v26, 0.0  ;;  %1146 = vrcp.f32 %v406_v44 }
 0x31a   :  { %v441_v39 = vmul.f32 %v1145_v35, %v1688_v22  ;;  %1148 = vrcp.f32 %v408_v1 }
 0x31b   :  { %568 = vmatmul.f32.gmra.mxu3 %v515_v0 }
 0x31c   :  { %494 = vmatmul.f32.gmra.mxu2 %v441_v39 }
 0x31e   :  { %v474_v42 = vpop.f32.mrf.mxu2 }
 0x31f   :  { %v1147_v24 = vpop.eup %1146  ;;  %v475_v17 = vadd.f32 %v474_v42, %v1739_v53 }
 0x320   :  { %v442_v45 = vmul.f32 %v1147_v24, %v1699_v37  ;;  %v1149_v59 = vpop.eup %1148 }
 0x321   :  { %v516_v63 = vmax.f32 %v475_v17, 0.0  ;;  %v443_v51 = vmul.f32 %v1149_v59, %v1683_v21 }
 0x322   :  { %v410_v47 = vpop.xlane.xlu0 %409 }
 0x323   :  { %571 = vmatmul.f32.gmra.mxu3 %v516_v63  ;;  %1150 = vrcp.f32 %v410_v47 }
 0x324   :  { %497 = vmatmul.f32.gmra.mxu2 %v442_v45 }
 0x326   :  { %v477_v6 = vpop.f32.mrf.mxu2 }
 0x327   :  { %v478_v11 = vadd.f32 %v477_v6, %v1739_v53 }
 0x328   :  { %v412_v4 = vpop.xlane.xlu1 %411 }
 0x329   :  { %v517_v22 = vmax.f32 %v478_v11, 0.0  ;;  %v1151_v55 = vpop.eup %1150  ;;  %1152 = vrcp.f32 %v412_v4 }
 0x32a   :  { %v444_v36 = vmul.f32 %v1151_v55, %v1705_v49  ;;  %v1759_v49 = vld [vmem:[%s2011_s4 + $0x8] sm:$0xff] }
 0x32b   :  { %574 = vmatmul.f32.gmra.mxu3 %v517_v22  ;;  %v1762_v14 = vperm.slane %v1759_v49, 1 }
 0x32c   :  { %500 = vmatmul.f32.gmra.mxu2 %v443_v51 }
 0x32e   :  { %v480_v52 = vpop.f32.mrf.mxu2 }
 0x32f   :  { %v481_v56 = vadd.f32 %v480_v52, %v1739_v53  ;;  %v1153_v34 = vpop.eup %1152 }
 0x330   :  { %v445_v21 = vmul.f32 %v1153_v34, %v1709_v15 }
 0x331   :  { %v518_v37 = vmax.f32 %v481_v56, 0.0 }
 0x333   :  { %577 = vmatmul.f32.gmra.mxu3 %v518_v37 }
 0x334   :  { %503 = vmatmul.f32.gmra.mxu2 %v444_v36 }
 0x336   :  { %v483_v58 = vpop.f32.mrf.mxu2 }
 0x337   :  { %v484_v40 = vadd.f32 %v483_v58, %v1739_v53 }
 0x339   :  { %v519_v62 = vmax.f32 %v484_v40, 0.0 }
 0x33b   :  { %580 = vmatmul.f32.gmra.mxu3 %v519_v62 }
 0x33c   :  { %506 = vmatmul.f32.gmra.mxu2 %v445_v21 }
 0x381   :  { %v414_v38 = vpop.xlane.xlu2 %413 }
 0x382   :  { %1154 = vrcp.f32 %v414_v38 }
 0x387   :  { %v486_v27 = vpop.f32.mrf.mxu2 }
 0x388   :  { %v1155_v5 = vpop.eup %1154  ;;  %v487_v10 = vadd.f32 %v486_v27, %v1739_v53 }
 0x389   :  { %v446_v12 = vmul.f32 %v1155_v5, %v1141_v29 }
 0x38a   :  { %v520_v13 = vmax.f32 %v487_v10, 0.0 }
 0x38b   :  { %509 = vmatmul.f32.gmra.mxu2 %v446_v12 }
 0x38c   :  { %583 = vmatmul.f32.gmra.mxu3 %v520_v13 }
 0x38d   :  { %v1764_v15 = vpop.f32.mrf.mxu3 }
 0x38e   :  { %v612_v18 = vmul.f32 %v1762_v14, %v1764_v15 }
 0x38f   :  { %v489_v16 = vpop.f32.mrf.mxu2 }
 0x390   :  { %v490_v19 = vadd.f32 %v489_v16, %v1739_v53  ;;  %628 = vadd.xlane.f32.xlu0 %v612_v18 }
 0x392   :  { %v521_v32 = vmax.f32 %v490_v19, 0.0 }
 0x394   :  { %586 = vmatmul.f32.gmra.mxu3 %v521_v32 }
 0x395   :  { %v1769_v50 = vpop.f32.mrf.mxu3 }
 0x396   :  { %v613_v41 = vmul.f32 %v1762_v14, %v1769_v50 }
 0x397   :  { %v492_v29 = vpop.f32.mrf.mxu2 }
 0x398   :  { %v493_v48 = vadd.f32 %v492_v29, %v1739_v53  ;;  %630 = vadd.xlane.f32.xlu1 %v613_v41 }
 0x39a   :  { %v522_v23 = vmax.f32 %v493_v48, 0.0 }
 0x39c   :  { %589 = vmatmul.f32.gmra.mxu3 %v522_v23 }
 0x39e   :  { %v1774_v25 = vpop.f32.mrf.mxu3 }
 0x39f   :  { %v495_v26 = vpop.f32.mrf.mxu2  ;;  %v614_v44 = vmul.f32 %v1762_v14, %v1774_v25 }
 0x3a0   :  { %v496_v35 = vadd.f32 %v495_v26, %v1739_v53 }
 0x3a1   :  { %632 = vadd.xlane.f32.xlu2 %v614_v44 }
 0x3a2   :  { %v523_v0 = vmax.f32 %v496_v35, 0.0 }
 0x3a4   :  { %592 = vmatmul.f32.gmra.mxu3 %v523_v0 }
 0x3a6   :  { %v1779_v39 = vpop.f32.mrf.mxu3 }
 0x3a7   :  { %v498_v1 = vpop.f32.mrf.mxu2  ;;  %v615_v42 = vmul.f32 %v1762_v14, %v1779_v39 }
 0x3a8   :  { %v499_v24 = vadd.f32 %v498_v1, %v1739_v53 }
 0x3a9   :  { %634 = vadd.xlane.f32.xlu0 %v615_v42 }
 0x3aa   :  { %v524_v17 = vmax.f32 %v499_v24, 0.0 }
 0x3ac   :  { %595 = vmatmul.f32.gmra.mxu3 %v524_v17 }
 0x3ae   :  { %v575_v63 = vpop.f32.mrf.mxu3 }
 0x3af   :  { %v501_v45 = vpop.f32.mrf.mxu2  ;;  %v616_v47 = vmul.f32 %v1762_v14, %v575_v63 }
 0x3b0   :  { %v502_v6 = vadd.f32 %v501_v45, %v1739_v53 }
 0x3b1   :  { %636 = vadd.xlane.f32.xlu1 %v616_v47 }
 0x3b2   :  { %v525_v59 = vmax.f32 %v502_v6, 0.0 }
 0x3b4   :  { %598 = vmatmul.f32.gmra.mxu3 %v525_v59 }
 0x3b6   :  { %v578_v11 = vpop.f32.mrf.mxu3 }
 0x3b7   :  { %v504_v22 = vpop.f32.mrf.mxu2  ;;  %v617_v51 = vmul.f32 %v1762_v14, %v578_v11 }
 0x3b8   :  { %v505_v4 = vadd.f32 %v504_v22, %v1739_v53 }
 0x3b9   :  { %638 = vadd.xlane.f32.xlu2 %v617_v51 }
 0x3ba   :  { %v526_v52 = vmax.f32 %v505_v4, 0.0 }
 0x3bc   :  { %601 = vmatmul.f32.gmra.mxu3 %v526_v52 }
 0x3be   :  { %v581_v55 = vpop.f32.mrf.mxu3 }
 0x3bf   :  { %v507_v56 = vpop.f32.mrf.mxu2  ;;  %v618_v37 = vmul.f32 %v1762_v14, %v581_v55 }
 0x3c0   :  { %v508_v36 = vadd.f32 %v507_v56, %v1739_v53 }
 0x3c1   :  { %640 = vadd.xlane.f32.xlu1 %v618_v37 }
 0x3c2   :  { %v527_v58 = vmax.f32 %v508_v36, 0.0 }
 0x3c4   :  { %604 = vmatmul.f32.gmra.mxu3 %v527_v58 }
 0x403   :  { %v629_v19 = vpop.xlane.xlu0 %628 }
 0x40b   :  { %v631_v29 = vpop.xlane.xlu1 %630 }
 0x40e   :  { %v510_v34 = vpop.f32.mrf.mxu2 }
 0x40f   :  { %v511_v40 = vadd.f32 %v510_v34, %v1739_v53  ;;  %v1791_v21 = vpop.f32.mrf.mxu3 }
 0x410   :  { %v619_v6 = vmul.f32 %v1762_v14, %v1791_v21 }
 0x411   :  { %v528_v62 = vmax.f32 %v511_v40, 0.0 }
 0x413   :  { %607 = vmatmul.f32.gmra.mxu3 %v528_v62 }
 0x414   :  { %v633_v41 = vpop.xlane.xlu2 %632 }
 0x417   :  { %v1793_v38 = vpop.f32.mrf.mxu3 }
 0x418   :  { %v620_v2 = vmul.f32 %v1762_v14, %v1793_v38 }
 0x41c   :  { %v635_v24 = vpop.xlane.xlu0 %634 }
 0x41f   :  { %v1795_v27 = vpop.f32.mrf.mxu3 }
 0x420   :  { %v621_v3 = vmul.f32 %v1762_v14, %v1795_v27 }
 0x427   :  { %v1797_v5 = vpop.f32.mrf.mxu3 }
 0x428   :  { %v622_v34 = vmul.f32 %v1762_v14, %v1797_v5 }
 0x42c   :  { %v639_v17 = vpop.xlane.xlu2 %638 }
 0x42f   :  { %v1799_v10 = vpop.f32.mrf.mxu3 }
 0x430   :  { %v623_v30 = vmul.f32 %v1762_v14, %v1799_v10 }
 0x437   :  { %v1801_v12 = vpop.f32.mrf.mxu3 }
 0x438   :  { %v624_v31 = vmul.f32 %v1762_v14, %v1801_v12 }
 0x43f   :  { %v1803_v13 = vpop.f32.mrf.mxu3 }
 0x440   :  { %v625_v62 = vmul.f32 %v1762_v14, %v1803_v13 }
 0x447   :  { %v1805_v16 = vpop.f32.mrf.mxu3 }
 0x496   :  { %v1807_v18 = vpop.f32.mrf.mxu3 }
 0x497   :  { %660 = vmatpush.xpose.msra.mxu1 %v1807_v18  ;;  %906 = vmatpush.msrb.mxu0 %v1807_v18 }
 0x499   :  { %907 = vmatpush.msrb.mxu0 %v1805_v16 }
 0x49b   :  { %661 = vmatpush.xpose.msra.mxu1 %v1805_v16  ;;  %908 = vmatpush.msrb.mxu0 %v1803_v13 }
 0x49d   :  { %909 = vmatpush.msrb.mxu0 %v1801_v12 }
 0x49f   :  { %662 = vmatpush.xpose.msra.mxu1 %v1803_v13  ;;  %910 = vmatpush.msrb.mxu0 %v1799_v10 }
 0x4a1   :  { %911 = vmatpush.msrb.mxu0 %v1797_v5 }
 0x4a3   :  { %663 = vmatpush.xpose.msra.mxu1 %v1801_v12  ;;  %912 = vmatpush.msrb.mxu0 %v1795_v27 }
 0x4a5   :  { %913 = vmatpush.msrb.mxu0 %v1793_v38 }
 0x4a7   :  { %664 = vmatpush.xpose.msra.mxu1 %v1799_v10  ;;  %914 = vmatpush.msrb.mxu0 %v1791_v21 }
 0x4a9   :  { %915 = vmatpush.msrb.mxu0 %v581_v55 }
 0x4ab   :  { %665 = vmatpush.xpose.msra.mxu1 %v1797_v5  ;;  %916 = vmatpush.msrb.mxu0 %v578_v11 }
 0x4ad   :  { %917 = vmatpush.msrb.mxu0 %v575_v63 }
 0x4af   :  { %666 = vmatpush.xpose.msra.mxu1 %v1795_v27  ;;  %918 = vmatpush.msrb.mxu0 %v1779_v39  ;;  %v627_v27 = vmul.f32 %v1762_v14, %v1807_v18 }
 0x4b1   :  { %919 = vmatpush.msrb.mxu0 %v1774_v25 }
 0x4b3   :  { %667 = vmatpush.xpose.msra.mxu1 %v1793_v38  ;;  %920 = vmatpush.msrb.mxu0 %v1769_v50  ;;  %v626_v38 = vmul.f32 %v1762_v14, %v1805_v16 }
 0x4b5   :  { %921 = vmatpush.msrb.mxu0 %v1764_v15 }
 0x4b7   :  { %668 = vmatpush.xpose.msra.mxu1 %v1791_v21 }
 0x4bb   :  { %669 = vmatpush.xpose.msra.mxu1 %v581_v55 }
 0x4bf   :  { %670 = vmatpush.xpose.msra.mxu1 %v578_v11 }
 0x4c3   :  { %671 = vmatpush.xpose.msra.mxu1 %v575_v63  ;;  %v637_v63 = vpop.xlane.xlu1 %636 }
 0x4c7   :  { %672 = vmatpush.xpose.msra.mxu1 %v1779_v39 }
 0x4cb   :  { %673 = vmatpush.xpose.msra.mxu1 %v1774_v25  ;;  %v641_v36 = vpop.xlane.xlu1 %640 }
 0x4cf   :  { %674 = vmatpush.xpose.msra.mxu1 %v1769_v50 }
 0x4d3   :  { %675 = vmatpush.xpose.msra.mxu1 %v1764_v15 }
 0x4d6   :  { %676 = vmatmul.f32.vlgmr.msra.gmra.mxu1 %v1759_v49 }
 0x553   :  { %v677_v53 = vpop.f32.mrf.mxu1 }
 0x554   :  { %v1836_v32 = vperm.slane %v677_v53, 0 }
 0x556   :  { %v683_v48 = vadd.f32 %v1836_v32, %v633_v41  ;;  %v681_v23 = vadd.f32 %v1836_v32, %v629_v19  ;;  %v682_v26 = vadd.f32 %v1836_v32, %v631_v29  ;;  %v686_v45 = vadd.f32 %v1836_v32, %v639_v17 }
 0x557   :  { %v684_v9 = vadd.f32 %v1836_v32, %v635_v24  ;;  %v685_v47 = vadd.f32 %v1836_v32, %v637_v63  ;;  %v687_v58 = vadd.f32 %v1836_v32, %v641_v36 }
 0x558   :  { %vm699_vm2 = vcmp.gt.f32.partialorder %v683_v48, 0.0  ;;  %v715_v25 = vmul.f32 0.2, %v683_v48  ;;  %vm697_vm7 = vcmp.gt.f32.partialorder %v681_v23, 0.0  ;;  %v713_v50 = vmul.f32 0.2, %v681_v23 }
 0x559   :  { %vm698_vm12 = vcmp.gt.f32.partialorder %v682_v26, 0.0  ;;  %v714_v15 = vmul.f32 0.2, %v682_v26  ;;  %v718_v59 = vmul.f32 0.2, %v686_v45 }
 0x55a   :  { %v731_v44 = vsel %vm699_vm2, %v683_v48, %v715_v25  ;;  %v729_v35 = vsel %vm697_vm7, %v681_v23, %v713_v50  ;;  %v716_v11 = vmul.f32 0.2, %v684_v9  ;;  %v717_v22 = vmul.f32 0.2, %v685_v47 }
 0x55b   :  { %v1843_v0 = vsel %vm273_vm5, %v731_v44, -1e+30  ;;  %v745_v39 = vsel %vm271_vm1, %v729_v35, -1e+30  ;;  %v730_v1 = vsel %vm698_vm12, %v682_v26, %v714_v15  ;;  %vm700_vm1 = vcmp.gt.f32.partialorder %v684_v9, 0.0 }
 0x55c   :  { %765 = vmax.xlane.f32.xlu1 %v1843_v0  ;;  %761 = vmax.xlane.f32.xlu0 %v745_v39  ;;  %v746_v42 = vsel %vm272_vm0, %v730_v1, -1e+30  ;;  %vm702_vm0 = vcmp.gt.f32.partialorder %v686_v45, 0.0  ;;  %vm701_vm5 = vcmp.gt.f32.partialorder %v685_v47, 0.0  ;;  %v732_v4 = vsel %vm700_vm1, %v684_v9, %v716_v11 }
 0x55d   :  { %763 = vmax.xlane.f32.xlu2 %v746_v42  ;;  %v734_v51 = vsel %vm702_vm0, %v686_v45, %v718_v59  ;;  %v733_v52 = vsel %vm701_vm5, %v685_v47, %v717_v22  ;;  %v1865_v56 = vsel %vm274_vm10, %v732_v4, -1e+30  ;;  %v719_v40 = vmul.f32 0.2, %v687_v58 }
 0x55e   :  { %v1861_v55 = vsel %vm276_vm11, %v734_v51, -1e+30  ;;  %v749_v37 = vsel %vm275_vm9, %v733_v52, -1e+30  ;;  %vm703_vm10 = vcmp.gt.f32.partialorder %v687_v58, 0.0  ;;  %vm2017_vm12 = vcmp.gt.f32.partialorder %v1628_v8, 0.0 }
 0x55f   :  { %v735_v28 = vsel %vm703_vm10, %v687_v58, %v719_v40  ;;  %vm2018_vm2 = vcmp.gt.f32.partialorder %v1647_v61, 0.0  ;;  %vm996_vm1 = vcmask 1041408  }
 0x560   :  { %v1882_v21 = vsel %vm277_vm13, %v735_v28, -1e+30 }
 0x564   :  { %646 = vadd.xlane.f32.xlu1 %v621_v3  ;;  %642 = vadd.xlane.f32.xlu0 %v619_v6 }
 0x565   :  { %644 = vadd.xlane.f32.xlu2 %v620_v2 }
 0x56c   :  { %771 = vmax.xlane.f32.xlu1 %v1861_v55  ;;  %767 = vmax.xlane.f32.xlu0 %v1865_v56 }
 0x56d   :  { %769 = vmax.xlane.f32.xlu2 %v749_v37 }
 0x574   :  { %652 = vadd.xlane.f32.xlu1 %v624_v31  ;;  %648 = vadd.xlane.f32.xlu0 %v622_v34 }
 0x575   :  { %650 = vadd.xlane.f32.xlu2 %v623_v30 }
 0x57c   :  { %654 = vadd.xlane.f32.xlu1 %v625_v62  ;;  %773 = vmax.xlane.f32.xlu0 %v1882_v21 }
 0x584   :  { %656 = vadd.xlane.f32.xlu1 %v626_v38 }
 0x58c   :  { %658 = vadd.xlane.f32.xlu1 %v627_v27 }
 0x5cf   :  { %v762_v5 = vpop.xlane.xlu0 %761  ;;  %v766_v10 = vpop.xlane.xlu1 %765 }
 0x5d0   :  { %v793_v12 = vsub.f32 %v745_v39, %v762_v5  ;;  %v764_v53 = vpop.xlane.xlu2 %763  ;;  %v795_v14 = vsub.f32 %v1843_v0, %v766_v10 }
 0x5d1   :  { %v794_v46 = vsub.f32 %v746_v42, %v764_v53 }
 0x5d2   :  { %v809_v13 = vmul.f32 1.442695, %v793_v12  ;;  %v813_v39 = vmul.f32 1.442695, %v795_v14 }
 0x5d3   :  { %v811_v41 = vmul.f32 1.442695, %v794_v46 }
 0x5d4   :  { %1156 = vpow2.f32 %v809_v13 }
 0x5d5   :  { %1158 = vpow2.f32 %v811_v41 }
 0x5d6   :  { %1160 = vpow2.f32 %v813_v39 }
 0x5d7   :  { %v643_v19 = vpop.xlane.xlu0 %642  ;;  %v647_v29 = vpop.xlane.xlu1 %646 }
 0x5d8   :  { %v688_v48 = vadd.f32 %v1836_v32, %v643_v19  ;;  %v645_v23 = vpop.xlane.xlu2 %644  ;;  %v690_v17 = vadd.f32 %v1836_v32, %v647_v29 }
 0x5d9   :  { %v689_v25 = vadd.f32 %v1836_v32, %v645_v23 }
 0x5da   :  { %v1890_v26 = vpop.eup %1156  ;;  %v720_v16 = vmul.f32 0.2, %v688_v48  ;;  %vm704_vm9 = vcmp.gt.f32.partialorder %v688_v48, 0.0  ;;  %v722_v9 = vmul.f32 0.2, %v690_v17  ;;  %vm706_vm13 = vcmp.gt.f32.partialorder %v690_v17, 0.0 }
 0x5db   :  { %841 = vadd.xlane.f32.xlu2 %v1890_v26  ;;  %v721_v15 = vmul.f32 0.2, %v689_v25  ;;  %vm705_vm11 = vcmp.gt.f32.partialorder %v689_v25, 0.0  ;;  %v1900_v24 = vpop.eup %1158 }
 0x5dc   :  { %v736_v18 = vsel %vm704_vm9, %v688_v48, %v720_v16  ;;  %v1911_v59 = vpop.eup %1160  ;;  %v738_v22 = vsel %vm706_vm13, %v690_v17, %v722_v9 }
 0x5dd   :  { %v1897_v50 = vsel %vm278_vm15, %v736_v18, -1e+30  ;;  %v737_v63 = vsel %vm705_vm11, %v689_v25, %v721_v15  ;;  %v1920_v52 = vsel %vm280_vm6, %v738_v22, -1e+30 }
 0x5de   :  { %775 = vmax.xlane.f32.xlu0 %v1897_v50  ;;  %v1907_v45 = vsel %vm279_vm3, %v737_v63, -1e+30 }
 0x5df   :  { %v768_v44 = vpop.xlane.xlu0 %767  ;;  %v772_v35 = vpop.xlane.xlu1 %771 }
 0x5e0   :  { %v770_v1 = vpop.xlane.xlu2 %769  ;;  %v796_v57 = vsub.f32 %v1865_v56, %v768_v44 }
 0x5e1   :  { %v797_v42 = vsub.f32 %v749_v37, %v770_v1  ;;  %v798_v37 = vsub.f32 %v1861_v55, %v772_v35 }
 0x5e2   :  { %v815_v6 = vmul.f32 1.442695, %v796_v57 }
 0x5e3   :  { %v817_v0 = vmul.f32 1.442695, %v797_v42  ;;  %843 = vadd.xlane.f32.xlu2 %v1900_v24  ;;  %v819_v28 = vmul.f32 1.442695, %v798_v37 }
 0x5e5   :  { %1162 = vpow2.f32 %v817_v0 }
 0x5e6   :  { %777 = vmax.xlane.f32.xlu0 %v1907_v45  ;;  %1164 = vpow2.f32 %v815_v6 }
 0x5e7   :  { %v649_v47 = vpop.xlane.xlu0 %648  ;;  %v653_v3 = vpop.xlane.xlu1 %652  ;;  %1166 = vpow2.f32 %v819_v28 }
 0x5e8   :  { %v693_v2 = vadd.f32 %v1836_v32, %v653_v3  ;;  %v691_v11 = vadd.f32 %v1836_v32, %v649_v47  ;;  %v651_v7 = vpop.xlane.xlu2 %650 }
 0x5e9   :  { %v692_v36 = vadd.f32 %v1836_v32, %v651_v7 }
 0x5ea   :  { %v725_v4 = vmul.f32 0.2, %v693_v2  ;;  %vm709_vm15 = vcmp.gt.f32.partialorder %v693_v2, 0.0  ;;  %v723_v56 = vmul.f32 0.2, %v691_v11  ;;  %vm707_vm3 = vcmp.gt.f32.partialorder %v691_v11, 0.0 }
 0x5eb   :  { %v1914_v51 = vpop.eup %1162  ;;  %845 = vadd.xlane.f32.xlu2 %v1911_v59  ;;  %v724_v62 = vmul.f32 0.2, %v692_v36  ;;  %vm708_vm6 = vcmp.gt.f32.partialorder %v692_v36, 0.0 }
 0x5ec   :  { %849 = vadd.xlane.f32.xlu1 %v1914_v51  ;;  %v741_v58 = vsel %vm709_vm15, %v693_v2, %v725_v4  ;;  %v1925_v34 = vpop.eup %1164  ;;  %v739_v40 = vsel %vm707_vm3, %v691_v11, %v723_v56 }
 0x5ed   :  { %v1930_v20 = vsel %vm283_vm8, %v741_v58, -1e+30  ;;  %v1936_v55 = vsel %vm281_vm14, %v739_v40, -1e+30  ;;  %v740_v27 = vsel %vm708_vm6, %v692_v36, %v724_v62  ;;  %v1945_v12 = vpop.eup %1166 }
 0x5ee   :  { %779 = vmax.xlane.f32.xlu0 %v1920_v52  ;;  %v1942_v33 = vsel %vm282_vm4, %v740_v27, -1e+30  ;;  %vm2016_vm4 = vcmp.gt.f32.partialorder %v1614_v60, 0.0 }
 0x5ef   :  { %v774_v31 = vpop.xlane.xlu0 %773  ;;  %v655_v30 = vpop.xlane.xlu1 %654 }
 0x5f0   :  { %v799_v38 = vsub.f32 %v1882_v21, %v774_v31  ;;  %v694_v10 = vadd.f32 %v1836_v32, %v655_v30 }
 0x5f2   :  { %v821_v5 = vmul.f32 1.442695, %v799_v38  ;;  %v726_v43 = vmul.f32 0.2, %v694_v10  ;;  %vm710_vm8 = vcmp.gt.f32.partialorder %v694_v10, 0.0 }
 0x5f3   :  { %847 = vadd.xlane.f32.xlu2 %v1925_v34 }
 0x5f4   :  { %785 = vmax.xlane.f32.xlu1 %v1930_v20  ;;  %1168 = vpow2.f32 %v821_v5  ;;  %v742_v46 = vsel %vm710_vm8, %v694_v10, %v726_v43 }
 0x5f5   :  { %v1954_v54 = vsel %vm2016_vm4, %v742_v46, -1e+30 }
 0x5f6   :  { %781 = vmax.xlane.f32.xlu0 %v1936_v55 }
 0x5f7   :  { %v657_v21 = vpop.xlane.xlu1 %656 }
 0x5f8   :  { %v695_v53 = vadd.f32 %v1836_v32, %v657_v21 }
 0x5fa   :  { %v1949_v13 = vpop.eup %1168  ;;  %v727_v19 = vmul.f32 0.2, %v695_v53  ;;  %vm711_vm14 = vcmp.gt.f32.partialorder %v695_v53, 0.0 }
 0x5fb   :  { %783 = vmax.xlane.f32.xlu2 %v1942_v33 }
 0x5fc   :  { %v743_v29 = vsel %vm711_vm14, %v695_v53, %v727_v19 }
 0x5fd   :  { %v1959_v41 = vsel %vm2017_vm12, %v743_v29, -1e+30 }
 0x5fe   :  { %851 = vadd.xlane.f32.xlu0 %v1945_v12 }
 0x5ff   :  { %v659_v18 = vpop.xlane.xlu1 %658 }
 0x600   :  { %v696_v8 = vadd.f32 %v1836_v32, %v659_v18 }
 0x602   :  { %v728_v17 = vmul.f32 0.2, %v696_v8  ;;  %vm712_vm7 = vcmp.gt.f32.partialorder %v696_v8, 0.0 }
 0x603   :  { %853 = vadd.xlane.f32.xlu2 %v1949_v13 }
 0x604   :  { %v744_v32 = vsel %vm712_vm7, %v696_v8, %v728_v17 }
 0x605   :  { %v1975_v47 = vsel %vm2018_vm2, %v744_v32, -1e+30 }
 0x606   :  { %787 = vmax.xlane.f32.xlu0 %v1954_v54 }
 0x60b   :  { %789 = vmax.xlane.f32.xlu2 %v1959_v41 }
 0x64e   :  { %v842_v48 = vpop.xlane.xlu2 %841 }
 0x64f   :  { %1170 = vrcp.f32 %v842_v48 }
 0x651   :  { %v776_v23 = vpop.xlane.xlu0 %775 }
 0x652   :  { %v800_v16 = vsub.f32 %v1897_v50, %v776_v23 }
 0x654   :  { %v823_v25 = vmul.f32 1.442695, %v800_v16 }
 0x655   :  { %v1171_v14 = vpop.eup %1170 }
 0x656   :  { %1172 = vpow2.f32 %v823_v25  ;;  %v844_v60 = vpop.xlane.xlu2 %843  ;;  %v889_v15 = vmul.f32 %v1171_v14, %v1890_v26 }
 0x657   :  { %1174 = vrcp.f32 %v844_v60 }
 0x658   :  { %922 = vmatmul.f32.vlgmr.msrb.gmra.mxu0 %v889_v15 }
 0x659   :  { %v778_v44 = vpop.xlane.xlu0 %777 }
 0x65a   :  { %v801_v35 = vsub.f32 %v1907_v45, %v778_v44 }
 0x65c   :  { %v1966_v39 = vpop.eup %1172  ;;  %v825_v1 = vmul.f32 1.442695, %v801_v35 }
 0x65d   :  { %v1175_v42 = vpop.eup %1174  ;;  %855 = vadd.xlane.f32.xlu1 %v1966_v39 }
 0x65e   :  { %1176 = vpow2.f32 %v825_v1  ;;  %v846_v50 = vpop.xlane.xlu2 %845  ;;  %v890_v63 = vmul.f32 %v1175_v42, %v1900_v24 }
 0x65f   :  { %1178 = vrcp.f32 %v846_v50  ;;  %v850_v26 = vpop.xlane.xlu1 %849 }
 0x660   :  { %925 = vmatmul.f32.gmra.mxu0 %v890_v63 }
 0x661   :  { %v780_v0 = vpop.xlane.xlu0 %779 }
 0x662   :  { %v802_v57 = vsub.f32 %v1920_v52, %v780_v0 }
 0x664   :  { %v1971_v45 = vpop.eup %1176  ;;  %v827_v9 = vmul.f32 1.442695, %v802_v57 }
 0x665   :  { %v1179_v3 = vpop.eup %1178  ;;  %857 = vadd.xlane.f32.xlu0 %v1971_v45  ;;  %791 = vmax.xlane.f32.xlu1 %v1975_v47 }
 0x666   :  { %1180 = vpow2.f32 %v827_v9  ;;  %v848_v24 = vpop.xlane.xlu2 %847  ;;  %v891_v6 = vmul.f32 %v1179_v3, %v1911_v59 }
 0x667   :  { %1182 = vrcp.f32 %v848_v24  ;;  %v786_v2 = vpop.xlane.xlu1 %785 }
 0x668   :  { %v805_v11 = vsub.f32 %v1930_v20, %v786_v2  ;;  %928 = vmatmul.f32.gmra.mxu0 %v891_v6  ;;  %1184 = vrcp.f32 %v850_v26 }
 0x669   :  { %v782_v22 = vpop.xlane.xlu0 %781 }
 0x66a   :  { %v833_v7 = vmul.f32 1.442695, %v805_v11  ;;  %v803_v61 = vsub.f32 %v1936_v55, %v782_v22 }
 0x66c   :  { %v1982_v4 = vpop.eup %1180  ;;  %v829_v52 = vmul.f32 1.442695, %v803_v61  ;;  %1186 = vpow2.f32 %v833_v7 }
 0x66d   :  { %v1183_v56 = vpop.eup %1182  ;;  %859 = vadd.xlane.f32.xlu2 %v1982_v4 }
 0x66e   :  { %1188 = vpow2.f32 %v829_v52  ;;  %v784_v37 = vpop.xlane.xlu2 %783  ;;  %v892_v59 = vmul.f32 %v1183_v56, %v1925_v34  ;;  %v1185_v30 = vpop.eup %1184 }
 0x66f   :  { %v804_v36 = vsub.f32 %v1942_v33, %v784_v37  ;;  %v893_v20 = vmul.f32 %v1185_v30, %v1914_v51 }
 0x670   :  { %931 = vmatmul.f32.gmra.mxu0 %v892_v59 }
 0x671   :  { %v831_v58 = vmul.f32 1.442695, %v804_v36  ;;  %v852_v31 = vpop.xlane.xlu0 %851 }
 0x672   :  { %v1987_v40 = vpop.eup %1186 }
 0x673   :  { %1190 = vpow2.f32 %v831_v58 }
 0x674   :  { %v1189_v28 = vpop.eup %1188  ;;  %1192 = vrcp.f32 %v852_v31 }
 0x675   :  { %861 = vadd.xlane.f32.xlu0 %v1189_v28  ;;  %865 = vadd.xlane.f32.xlu2 %v1987_v40 }
 0x676   :  { %v854_v62 = vpop.xlane.xlu2 %853 }
 0x677   :  { %1194 = vrcp.f32 %v854_v62 }
 0x678   :  { %934 = vmatmul.f32.gmra.mxu0 %v893_v20 }
 0x679   :  { %v1191_v38 = vpop.eup %1190  ;;  %v788_v34 = vpop.xlane.xlu0 %787 }
 0x67a   :  { %v806_v55 = vsub.f32 %v1954_v54, %v788_v34  ;;  %863 = vadd.xlane.f32.xlu1 %v1191_v38  ;;  %v1193_v27 = vpop.eup %1192 }
 0x67b   :  { %v894_v33 = vmul.f32 %v1193_v27, %v1945_v12 }
 0x67c   :  { %v835_v5 = vmul.f32 1.442695, %v806_v55 }
 0x67d   :  { %v1195_v53 = vpop.eup %1194 }
 0x67e   :  { %1196 = vpow2.f32 %v835_v5  ;;  %v790_v10 = vpop.xlane.xlu2 %789  ;;  %v895_v46 = vmul.f32 %v1195_v53, %v1949_v13 }
 0x67f   :  { %v807_v21 = vsub.f32 %v1959_v41, %v790_v10 }
 0x680   :  { %937 = vmatmul.f32.gmra.mxu0 %v894_v33 }
 0x681   :  { %v837_v43 = vmul.f32 1.442695, %v807_v21 }
 0x683   :  { %1198 = vpow2.f32 %v837_v43 }
 0x684   :  { %v1197_v51 = vpop.eup %1196 }
 0x685   :  { %867 = vadd.xlane.f32.xlu0 %v1197_v51 }
 0x688   :  { %940 = vmatmul.f32.gmra.mxu0 %v895_v46 }
 0x689   :  { %v1199_v19 = vpop.eup %1198 }
 0x68a   :  { %869 = vadd.xlane.f32.xlu1 %v1199_v19 }
 0x6d0   :  { %v856_v54 = vpop.xlane.xlu1 %855 }
 0x6d1   :  { %1200 = vrcp.f32 %v856_v54  ;;  %v971_v54 = vld [vmem:[%s2009_s2] sm:$0x3]  ;;  %s1250_s2 = smov [#allocation2]  }
 0x6d2   :  { %s1015_s20 = sshll.u32 %s1250_s2, 4  ;;  %s1016_s20 = int_to_ptr.vmem [resolvable:$true] %s1015_s20 }
 0x6d7   :  { %v1201_v29 = vpop.eup %1200 }
 0x6d8   :  { %v858_v48 = vpop.xlane.xlu0 %857  ;;  %v792_v23 = vpop.xlane.xlu1 %791  ;;  %v896_v12 = vmul.f32 %v1201_v29, %v1966_v39  ;;  %v992_v29 = vlaneseq }
 0x6d9   :  { %1202 = vrcp.f32 %v858_v48  ;;  %v808_v41 = vsub.f32 %v1975_v47, %v792_v23  ;;  %v923_v47 = vpop.f32.mrf.mxu0 }
 0x6da   :  { %943 = vmatmul.f32.gmra.mxu0 %v896_v12  ;;  %v993_v48 = vand.u32 127, %v992_v29 }
 0x6db   :  { %v839_v16 = vmul.f32 1.442695, %v808_v41 }
 0x6dc   :  { %vm994_vm0 = vcmp.lt.s32.totalorder %v993_v48, 4 }
 0x6dd   :  { %1204 = vpow2.f32 %v839_v16 }
 0x6df   :  { %v1203_v25 = vpop.eup %1202 }
 0x6e0   :  { %v860_v14 = vpop.xlane.xlu2 %859  ;;  %v897_v13 = vmul.f32 %v1203_v25, %v1971_v45 }
 0x6e1   :  { %1206 = vrcp.f32 %v860_v14  ;;  %v926_v3 = vpop.f32.mrf.mxu0 }
 0x6e2   :  { %946 = vmatmul.f32.gmra.mxu0 %v897_v13 }
 0x6e3   :  { %v1205_v18 = vpop.eup %1204 }
 0x6e4   :  { %871 = vadd.xlane.f32.xlu2 %v1205_v18 }
 0x6e7   :  { %v1207_v60 = vpop.eup %1206 }
 0x6e8   :  { %v862_v15 = vpop.xlane.xlu0 %861  ;;  %v898_v8 = vmul.f32 %v1207_v60, %v1982_v4  ;;  %v866_v1 = vpop.xlane.xlu2 %865 }
 0x6e9   :  { %1208 = vrcp.f32 %v862_v15  ;;  %v929_v11 = vpop.f32.mrf.mxu0 }
 0x6ea   :  { %949 = vmatmul.f32.gmra.mxu0 %v898_v8 }
 0x6ed   :  { %v864_v44 = vpop.xlane.xlu1 %863 }
 0x6ee   :  { %1210 = vrcp.f32 %v864_v44 }
 0x6ef   :  { %v1209_v35 = vpop.eup %1208  ;;  %1212 = vrcp.f32 %v866_v1 }
 0x6f0   :  { %v899_v39 = vmul.f32 %v1209_v35, %v1189_v28 }
 0x6f1   :  { %v932_v22 = vpop.f32.mrf.mxu0 }
 0x6f2   :  { %952 = vmatmul.f32.gmra.mxu0 %v899_v39 }
 0x6f4   :  { %v1211_v42 = vpop.eup %1210 }
 0x6f5   :  { %v900_v17 = vmul.f32 %v1211_v42, %v1191_v38  ;;  %v1213_v63 = vpop.eup %1212 }
 0x6f6   :  { %v901_v26 = vmul.f32 %v1213_v63, %v1987_v40  ;;  %v905_v40 = vperm.slane %v1759_v49, 2 }
 0x6f8   :  { %v868_v50 = vpop.xlane.xlu0 %867  ;;  %v933_v53 = vadd.f32 %v932_v22, %v905_v40  ;;  %v927_v46 = vadd.f32 %v926_v3, %v905_v40 }
 0x6f9   :  { %1214 = vrcp.f32 %v868_v50  ;;  %v935_v7 = vpop.f32.mrf.mxu0 }
 0x6fa   :  { %955 = vmatmul.f32.gmra.mxu0 %v900_v17  ;;  %v936_v43 = vadd.f32 %v935_v7, %v905_v40 }
 0x6fd   :  { %v870_v0 = vpop.xlane.xlu1 %869 }
 0x6fe   :  { %1216 = vrcp.f32 %v870_v0 }
 0x6ff   :  { %v1215_v32 = vpop.eup %1214 }
 0x700   :  { %v902_v57 = vmul.f32 %v1215_v32, %v1197_v51  ;;  %v930_v51 = vadd.f32 %v929_v11, %v905_v40 }
 0x701   :  { %v938_v61 = vpop.f32.mrf.mxu0 }
 0x702   :  { %958 = vmatmul.f32.gmra.mxu0 %v901_v26  ;;  %v939_v49 = vadd.f32 %v938_v61, %v905_v40 }
 0x704   :  { %v1217_v45 = vpop.eup %1216 }
 0x705   :  { %v903_v9 = vmul.f32 %v1217_v45, %v1199_v19  ;;  %v924_v19 = vadd.f32 %v923_v47, %v905_v40 }
 0x709   :  { %v941_v4 = vpop.f32.mrf.mxu0 }
 0x70a   :  { %961 = vmatmul.f32.gmra.mxu0 %v902_v57  ;;  %v942_v21 = vadd.f32 %v941_v4, %v905_v40 }
 0x712   :  { %964 = vmatmul.f32.gmra.mxu0 %v903_v9 }
 0x757   :  { %v872_v24 = vpop.xlane.xlu2 %871  ;;  %v944_v52 = vpop.f32.mrf.mxu0 }
 0x758   :  { %1218 = vrcp.f32 %v872_v24  ;;  %v945_v33 = vadd.f32 %v944_v52, %v905_v40 }
 0x75e   :  { %v1219_v6 = vpop.eup %1218 }
 0x75f   :  { %v904_v2 = vmul.f32 %v1219_v6, %v1205_v18  ;;  %v947_v56 = vpop.f32.mrf.mxu0 }
 0x760   :  { %v948_v10 = vadd.f32 %v947_v56, %v905_v40 }
 0x761   :  { %967 = vmatmul.f32.gmra.mxu0 %v904_v2 }
 0x767   :  { %v950_v37 = vpop.f32.mrf.mxu0 }
 0x768   :  { %v951_v5 = vadd.f32 %v950_v37, %v905_v40 }
 0x76f   :  { %v953_v59 = vpop.f32.mrf.mxu0 }
 0x770   :  { %v954_v27 = vadd.f32 %v953_v59, %v905_v40 }
 0x777   :  { %v956_v36 = vpop.f32.mrf.mxu0 }
 0x778   :  { %v957_v55 = vadd.f32 %v956_v36, %v905_v40 }
 0x77f   :  { %v959_v58 = vpop.f32.mrf.mxu0 }
 0x780   :  { %v960_v34 = vadd.f32 %v959_v58, %v905_v40 }
 0x787   :  { %v962_v31 = vpop.f32.mrf.mxu0 }
 0x788   :  { %v963_v38 = vadd.f32 %v962_v31, %v905_v40 }
 0x78f   :  { %v965_v30 = vpop.f32.mrf.mxu0 }
 0x790   :  { %v966_v20 = vadd.f32 %v965_v30, %v905_v40 }
 0x7de   :  { %v968_v28 = vpop.f32.mrf.mxu0 }
 0x7df   :  { %v969_v62 = vadd.f32 %v968_v28, %v905_v40 }
 0x7e1   :  { %972 = vmatpush.msrb.mxu1 %v969_v62 }
 0x7e3   :  { %973 = vmatpush.msrb.mxu1 %v966_v20 }
 0x7e5   :  { %974 = vmatpush.msrb.mxu1 %v963_v38 }
 0x7e7   :  { %975 = vmatpush.msrb.mxu1 %v960_v34 }
 0x7e9   :  { %976 = vmatpush.msrb.mxu1 %v957_v55 }
 0x7eb   :  { %977 = vmatpush.msrb.mxu1 %v954_v27 }
 0x7ed   :  { %978 = vmatpush.msrb.mxu1 %v951_v5 }
 0x7ef   :  { %979 = vmatpush.msrb.mxu1 %v948_v10 }
 0x7f1   :  { %980 = vmatpush.msrb.mxu1 %v945_v33 }
 0x7f3   :  { %981 = vmatpush.msrb.mxu1 %v942_v21 }
 0x7f5   :  { %982 = vmatpush.msrb.mxu1 %v939_v49 }
 0x7f7   :  { %983 = vmatpush.msrb.mxu1 %v936_v43 }
 0x7f9   :  { %984 = vmatpush.msrb.mxu1 %v933_v53 }
 0x7fb   :  { %985 = vmatpush.msrb.mxu1 %v930_v51 }
 0x7fd   :  { %986 = vmatpush.msrb.mxu1 %v927_v46 }
 0x7ff   :  { %987 = vmatpush.msrb.mxu1 %v924_v19 }
 0x800   :  { %988 = vmatmul.f32.vlgmr.msrb.gmra.mxu1 %v971_v54 }
 0x87d   :  { %v989_v23 = vpop.f32.mrf.mxu1 }
 0x87e   :  { %v995_v12 = vsel %vm994_vm0, %v989_v23, -1e+30 }
 0x87f   :  { %v997_v41 = vsel %vm996_vm1, %v995_v12, -inf }
 0x880   :  { %998 = vmax.xlane.f32.xlu0 %v997_v41 }
 0x8f3   :  { %v999_v16 = vpop.xlane.xlu0 %998 }
 0x8f4   :  { %v1000_v25 = vsub.f32 %v995_v12, %v999_v16 }
 0x8f6   :  { %v1001_v14 = vmul.f32 1.442695, %v1000_v25 }
 0x8f8   :  { %1220 = vpow2.f32 %v1001_v14 }
 0x8fe   :  { %v1221_v13 = vpop.eup %1220 }
 0x8ff   :  { %v1003_v18 = vsel %vm996_vm1, %v1221_v13, 0.0 }
 0x900   :  { %1004 = vadd.xlane.f32.xlu1 %v1003_v18 }
 0x973   :  { %v1005_v60 = vpop.xlane.xlu1 %1004 }
 0x974   :  { %1222 = vlog2.f32 %v1005_v60 }
 0x97a   :  { %v1223_v15 = vpop.eup %1222 }
 0x97b   :  { %v1007_v8 = vmul.f32 0.6931472, %v1223_v15 }
 0x97d   :  { %v1008_v44 = vsub.f32 %v1000_v25, %v1007_v8 }
 0x97f   :  { %1009 = vst [vmem:[#allocation2] sm:$0x3] %v1008_v44 }
 0x980   :  { %1020 = dma.vmem_to_hbm [thread:$0]  %s1016_s20, 32, %s1018_s23, [#allocation3]  }
 0x981   :  { %1248 = dma.done.wait [#allocation3], 32  }
 0x982   :  { %1249 = vsyncadd [#allocation3], 4294967264 }
 0x983   :  { %1025 = vsyncpa [#allocation3], 1 }

</bundles_post_ra>
